<compile_context>
chip_gen: v5e
topology: v5e:2x2
jax: 0.10.0
libtpu: 0.0.40
codegen_flags: <defaults>
</compile_context>

<pallas_src>
import functools

import jax
import jax.numpy as jnp
from jax.experimental import pallas as pl
from jax.experimental.pallas import tpu as pltpu


def bilstm_kernel(xc_ref, wih_ref, b_ref, whh_ref,
                  w1_ref, b1_ref, w2_ref, b2_ref,
                  out_ref, xg_ref, *, seq_len, batch, hidden_dim, mxu_dtype):
    T, B, H = seq_len, batch, hidden_dim
    H2, H4, H6, H8 = 2 * H, 4 * H, 6 * H, 8 * H

    # ---- hoisted, direction-combined input projection ----------------------
    # xc_ref: (T*B, 2D), rows = [x_t | x_{T-1-t}] (time-major, batch padded to a
    # sublane tile).  wih_ref: (2D, 8H) block-diagonal, gate columns ordered
    # [i_f,i_b,f_f,f_b,o_f,o_b,g_f,g_b].  One MXU op + bias covers all T steps
    # and both directions; parked in a VMEM scratch so the recurrence only does
    # tile-aligned loads (no per-step select, no sublane extraction).
    xg_ref[...] = (jnp.dot(xc_ref[...], wih_ref[...],
                           preferred_element_type=jnp.float32) + b_ref[...])

    whh = whh_ref[...]                      # (2H, 8H) block-diagonal, loop-invariant

    h = jnp.zeros((B, H2), jnp.float32)     # [h_fwd | h_bwd]  (f32 state)
    c = jnp.zeros((B, H2), jnp.float32)     # [c_fwd | c_bwd]
    z1 = jnp.zeros((B, H), jnp.float32)     # fc1 accumulator  (f32)

    # ---- fused bidirectional recurrence (statically unrolled, T is small) --
    for t in range(T):
        xg = xg_ref[t * B:(t + 1) * B, :]   # (B, 8H), 8-row tile-aligned load
        g = xg + jnp.dot(h.astype(mxu_dtype), whh,
                         preferred_element_type=jnp.float32)
        s = jax.nn.sigmoid(g[:, 0:H6])      # i/f/o gates, both directions
        c_in = jnp.tanh(g[:, H6:H8])        # g gate, both directions
        c = s[:, H2:H4] * c + s[:, 0:H2] * c_in
        h = s[:, H4:H6] * jnp.tanh(c)
        # fc1 accumulated in-loop against the host-permuted per-step weight
        # slice; off the recurrence critical path, no hs scratch / masked stores.
        z1 = z1 + jnp.dot(h.astype(mxu_dtype), w1_ref[t],
                          preferred_element_type=jnp.float32)

    # ---- FC head -----------------------------------------------------------
    z1 = z1 + b1_ref[...]
    z2 = (jnp.dot(z1.astype(mxu_dtype), w2_ref[...],
                  preferred_element_type=jnp.float32) + b2_ref[...])
    out_ref[...] = jax.nn.sigmoid(z2)


def _interleave_gates(a_f, a_b, hidden_dim):
    """PyTorch gate blocks [i,f,g,o] of the two directions -> kernel column
    order [i_f,i_b,f_f,f_b,o_f,o_b,g_f,g_b] (sigmoid gates contiguous in the
    first 6H lanes, the tanh gate in the last 2H lanes)."""
    H = hidden_dim

    def chunks(a):
        return a[..., 0:H], a[..., H:2 * H], a[..., 2 * H:3 * H], a[..., 3 * H:4 * H]

    i_f, f_f, g_f, o_f = chunks(a_f)
    i_b, f_b, g_b, o_b = chunks(a_b)
    return jnp.concatenate([i_f, i_b, f_f, f_b, o_f, o_b, g_f, g_b], axis=-1)


def init_params(key, input_dim, hidden_dim, output_dim, input_len):
    H = hidden_dim
    bound = 1.0 / jnp.sqrt(jnp.float32(H))
    keys = jax.random.split(key, 12)

    def u(k_, shape):
        return jax.random.uniform(k_, shape, jnp.float32, -bound, bound)

    return dict(
        wih_f=u(keys[0], (input_dim, 4 * H)),    # weight_ih_l0.T
        whh_f=u(keys[1], (H, 4 * H)),            # weight_hh_l0.T
        b_f=u(keys[2], (1, 4 * H)) + u(keys[3], (1, 4 * H)),
        wih_b=u(keys[4], (input_dim, 4 * H)),    # weight_ih_l0_reverse.T
        whh_b=u(keys[5], (H, 4 * H)),            # weight_hh_l0_reverse.T
        b_b=u(keys[6], (1, 4 * H)) + u(keys[7], (1, 4 * H)),
        w1t=u(keys[8], (input_len * 2 * H, H)),  # fc[0].weight.T
        b1=u(keys[9], (1, H)),
        w2t=u(keys[10], (H, output_dim)),        # fc[1].weight.T
        b2=u(keys[11], (1, output_dim)),
    )


def bilstm_forward(seq, params, *, input_dim, hidden_dim, output_dim, input_len,
                   mxu_dtype=jnp.float32):
    B = seq.shape[0]
    H, T, D, O = hidden_dim, input_len, input_dim, output_dim
    H2 = 2 * H

    # Pad batch to a full sublane tile (8 rows): fills MXU rows / vreg sublanes
    # and makes every per-step slice in the kernel (8,128)-tile aligned.
    BP = ((max(B, 1) + 7) // 8) * 8

    x = seq.reshape(B, T, D).astype(jnp.float32)
    x = jnp.pad(x, ((0, BP - B), (0, 0), (0, 0)))
    x_tm = jnp.transpose(x, (1, 0, 2))                          # (T, BP, D)
    # Direction-combined rows [x_t | x_{T-1-t}]: with a block-diagonal input
    # weight this removes the per-step fwd/bwd select from the recurrence.
    x_c = jnp.concatenate([x_tm, x_tm[::-1]], axis=-1)          # (T, BP, 2D)
    x_c = x_c.reshape(T * BP, 2 * D)

    zD = jnp.zeros_like(params["wih_f"])
    zH = jnp.zeros_like(params["whh_f"])
    wih_c = jnp.concatenate([
        _interleave_gates(params["wih_f"], zD, H),   # rows fed by x_t
        _interleave_gates(zD, params["wih_b"], H),   # rows fed by x_{T-1-t}
    ], axis=0)                                                  # (2D, 8H)
    b_c = _interleave_gates(params["b_f"], params["b_b"], H)    # (1, 8H)
    whh_bd = jnp.concatenate([
        _interleave_gates(params["whh_f"], zH, H),   # rows fed by h_fwd
        _interleave_gates(zH, params["whh_b"], H),   # rows fed by h_bwd
    ], axis=0)                                                  # (2H, 8H)

    # fc1 weight regrouped per loop step: step t consumes h = [h_fwd(t) |
    # h_bwd(T-1-t)], so the time-reversal/interleave permutation is folded into
    # the weight here (free at trace time) and the kernel just accumulates
    # z1 += h_t @ w1_steps[t].
    w1 = params["w1t"].reshape(T, H2, H)
    w1_steps = jnp.concatenate([w1[:, :H, :], w1[::-1, H:, :]], axis=1)  # (T,2H,H)

    mx = lambda a: a.astype(mxu_dtype)

    kernel = functools.partial(bilstm_kernel, seq_len=T, batch=BP,
                               hidden_dim=H, mxu_dtype=mxu_dtype)
    vmem = pl.BlockSpec(memory_space=pltpu.MemorySpace.VMEM)

    msize = jnp.dtype(mxu_dtype).itemsize
    cost = pl.CostEstimate(
        flops=(2 * T * BP * (2 * D) * 8 * H       # input projection
               + 2 * T * BP * H2 * 8 * H          # recurrence
               + 2 * T * BP * H2 * H              # fc1 (accumulated per step)
               + 2 * BP * H * O),                 # fc2
        transcendentals=T * BP * 10 * H + BP * O,
        bytes_accessed=(msize * (T * BP * 2 * D + 2 * D * 8 * H
                                 + H2 * 8 * H + T * H2 * H + H * O)
                        + 4 * (8 * H + H + O + BP * O)),
    )

    out = pl.pallas_call(
        kernel,
        out_shape=jax.ShapeDtypeStruct((BP, O), jnp.float32),
        in_specs=[vmem] * 8,
        out_specs=vmem,
        scratch_shapes=[pltpu.VMEM((T * BP, 8 * H), jnp.float32)],
        compiler_params=pltpu.CompilerParams(
            vmem_limit_bytes=32 * 1024 * 1024),
        cost_estimate=cost,
    )(mx(x_c), mx(wih_c), b_c, mx(whh_bd),
      mx(w1_steps), params["b1"], mx(params["w2t"]), params["b2"])

    return out[:B]


def bilstm_ref(seq, params, input_dim, hidden_dim, input_len):
    """Pure-JAX reference mirroring torch.nn.LSTM(bidirectional) + fc head."""
    B = seq.shape[0]
    x = seq.reshape(B, input_len, input_dim).astype(jnp.float32)

    def run_dir(x_dir, wih, whh, b):
        def step(carry, x_t):
            h, c = carry
            gates = x_t @ wih + h @ whh + b
            i, f, g, o = jnp.split(gates, 4, axis=-1)
            i, f, o = jax.nn.sigmoid(i), jax.nn.sigmoid(f), jax.nn.sigmoid(o)
            g = jnp.tanh(g)
            c = f * c + i * g
            h = o * jnp.tanh(c)
            return (h, c), h

        init = (jnp.zeros((B, hidden_dim), jnp.float32),
                jnp.zeros((B, hidden_dim), jnp.float32))
        _, hs = jax.lax.scan(step, init, jnp.transpose(x_dir, (1, 0, 2)))
        return jnp.transpose(hs, (1, 0, 2))  # (B, T, H)

    h_fwd = run_dir(x, params["wih_f"], params["whh_f"], params["b_f"][0])
    h_bwd = run_dir(x[:, ::-1], params["wih_b"], params["whh_b"],
                    params["b_b"][0])[:, ::-1]
    res = jnp.concatenate([h_fwd, h_bwd], axis=-1)     # (B, T, 2H)
    lstm_out = res.reshape(B, -1)                      # (B, T*2H)
    z1 = lstm_out @ params["w1t"] + params["b1"][0]
    z2 = z1 @ params["w2t"] + params["b2"][0]
    return jax.nn.sigmoid(z2)


if __name__ == "__main__":
    B, D, H, O, T = 2, 4, 32, 4, 8   # batch, input_dim, hidden_dim, output_dim, input_len
    key = jax.random.PRNGKey(0)
    pkey, xkey = jax.random.split(key)

    params = init_params(pkey, D, H, O, T)
    seq = jax.random.normal(xkey, (B, T, D), jnp.float32)

    ref = bilstm_ref(seq, params, D, H, T)

    # f32 MXU operands: strict parity with the f32 reference.
    out = bilstm_forward(seq, params, input_dim=D, hidden_dim=H,
                         output_dim=O, input_len=T, mxu_dtype=jnp.float32)
    out = jax.block_until_ready(out)
    assert out.shape == (B, O), out.shape
    assert jnp.allclose(out, ref, atol=5e-5, rtol=5e-5), (out, ref)

    # bf16 MXU operands (recommended on v6e/v7x): f32 state/accumulation keeps the
    # deviation small; compare against the f32 reference at a bf16 tolerance.
    out_bf16 = bilstm_forward(seq, params, input_dim=D, hidden_dim=H,
                              output_dim=O, input_len=T, mxu_dtype=jnp.bfloat16)
    out_bf16 = jax.block_until_ready(out_bf16)
    assert out_bf16.shape == (B, O), out_bf16.shape
    assert jnp.allclose(out_bf16, ref, atol=2e-2, rtol=2e-2), (out_bf16, ref)

    print("KERNEL_OK")
</pallas_src>

<mosaic_0001>
module attributes {stable_mosaic.version = 11 : i64} {
  func.func @bilstm_kernel(%arg0: memref<64x8xf32, #tpu.memory_space<vmem>>, %arg1: memref<8x256xf32, #tpu.memory_space<vmem>>, %arg2: memref<1x256xf32, #tpu.memory_space<vmem>>, %arg3: memref<64x256xf32, #tpu.memory_space<vmem>>, %arg4: memref<8x64x32xf32, #tpu.memory_space<vmem>>, %arg5: memref<1x32xf32, #tpu.memory_space<vmem>>, %arg6: memref<32x4xf32, #tpu.memory_space<vmem>>, %arg7: memref<1x4xf32, #tpu.memory_space<vmem>>, %arg8: memref<8x4xf32, #tpu.memory_space<vmem>>, %arg9: memref<64x256xf32, #tpu.memory_space<vmem>>) attributes {dimension_semantics = [], scalar_prefetch = 0 : i64, scratch_operands = 1 : i64, tpu.core_type = #tpu.core_type<tc>} {
    %c0 = arith.constant 0 : index
    %c0_0 = arith.constant 0 : index
    %0 = vector.load %arg0[%c0, %c0_0] : memref<64x8xf32, #tpu.memory_space<vmem>>, vector<64x8xf32>
    %c0_1 = arith.constant 0 : index
    %c0_2 = arith.constant 0 : index
    %1 = vector.load %arg1[%c0_1, %c0_2] : memref<8x256xf32, #tpu.memory_space<vmem>>, vector<8x256xf32>
    %cst = arith.constant dense<0.000000e+00> : vector<64x256xf32>
    %2 = tpu.matmul %0, %1, %cst {dimension_numbers = #tpu.dot_dimension_numbers<[1], [0], [0], [1], [0, 0, 1, 1], [], []>} : vector<64x8xf32>, vector<8x256xf32>, vector<64x256xf32> -> vector<64x256xf32>
    %c0_3 = arith.constant 0 : index
    %c0_4 = arith.constant 0 : index
    %3 = vector.load %arg2[%c0_3, %c0_4] : memref<1x256xf32, #tpu.memory_space<vmem>>, vector<1x256xf32>
    %4 = vector.broadcast %3 : vector<1x256xf32> to vector<64x256xf32>
    %5 = arith.addf %2, %4 : vector<64x256xf32>
    %c0_5 = arith.constant 0 : index
    %c0_6 = arith.constant 0 : index
    %6 = vector.load %arg9[%c0_5, %c0_6] : memref<64x256xf32, #tpu.memory_space<vmem>>, vector<64x256xf32>
    tpu.vector_store %arg9[%c0_5, %c0_6], %5 {strides = array<i32>} : memref<64x256xf32, #tpu.memory_space<vmem>>, vector<64x256xf32>,
    %c0_7 = arith.constant 0 : index
    %c0_8 = arith.constant 0 : index
    %7 = vector.load %arg3[%c0_7, %c0_8] : memref<64x256xf32, #tpu.memory_space<vmem>>, vector<64x256xf32>
    %cst_9 = arith.constant 0.000000e+00 : f32
    %8 = vector.broadcast %cst_9 : f32 to vector<8x64xf32>
    %cst_10 = arith.constant 0.000000e+00 : f32
    %9 = vector.broadcast %cst_10 : f32 to vector<8x64xf32>
    %cst_11 = arith.constant 0.000000e+00 : f32
    %10 = vector.broadcast %cst_11 : f32 to vector<8x32xf32>
    %c0_12 = arith.constant 0 : index
    %c0_13 = arith.constant 0 : index
    %11 = vector.load %arg9[%c0_12, %c0_13] : memref<64x256xf32, #tpu.memory_space<vmem>>, vector<8x256xf32>
    %cst_14 = arith.constant dense<0.000000e+00> : vector<8x256xf32>
    %12 = tpu.matmul %8, %7, %cst_14 {dimension_numbers = #tpu.dot_dimension_numbers<[1], [0], [0], [1], [0, 0, 1, 1], [], []>} : vector<8x64xf32>, vector<64x256xf32>, vector<8x256xf32> -> vector<8x256xf32>
    %13 = arith.addf %11, %12 : vector<8x256xf32>
    %14 = vector.extract_strided_slice %13 {offsets = [0, 0], sizes = [8, 192], strides = [1, 1]} : vector<8x256xf32> to vector<8x192xf32>
    %15 = arith.negf %14 : vector<8x192xf32>
    %16 = math.exp %15 : vector<8x192xf32>
    %cst_15 = arith.constant 1.000000e+00 : f32
    %17 = vector.broadcast %cst_15 : f32 to vector<8x192xf32>
    %18 = arith.addf %17, %16 : vector<8x192xf32>
    %19 = arith.divf %17, %18 : vector<8x192xf32>
    %20 = vector.extract_strided_slice %13 {offsets = [0, 192], sizes = [8, 64], strides = [1, 1]} : vector<8x256xf32> to vector<8x64xf32>
    %21 = math.tanh %20 : vector<8x64xf32>
    %22 = vector.extract_strided_slice %19 {offsets = [0, 64], sizes = [8, 64], strides = [1, 1]} : vector<8x192xf32> to vector<8x64xf32>
    %23 = arith.mulf %22, %9 : vector<8x64xf32>
    %24 = vector.extract_strided_slice %19 {offsets = [0, 0], sizes = [8, 64], strides = [1, 1]} : vector<8x192xf32> to vector<8x64xf32>
    %25 = arith.mulf %24, %21 : vector<8x64xf32>
    %26 = arith.addf %23, %25 : vector<8x64xf32>
    %27 = vector.extract_strided_slice %19 {offsets = [0, 128], sizes = [8, 64], strides = [1, 1]} : vector<8x192xf32> to vector<8x64xf32>
    %28 = math.tanh %26 : vector<8x64xf32>
    %29 = arith.mulf %27, %28 : vector<8x64xf32>
    %c0_16 = arith.constant 0 : index
    %c0_17 = arith.constant 0 : index
    %c0_18 = arith.constant 0 : index
    %30 = vector.load %arg4[%c0_16, %c0_17, %c0_18] : memref<8x64x32xf32, #tpu.memory_space<vmem>>, vector<1x64x32xf32>
    %31 = vector.shape_cast %30 : vector<1x64x32xf32> to vector<64x32xf32>
    %cst_19 = arith.constant dense<0.000000e+00> : vector<8x32xf32>
    %32 = tpu.matmul %29, %31, %cst_19 {dimension_numbers = #tpu.dot_dimension_numbers<[1], [0], [0], [1], [0, 0, 1, 1], [], []>} : vector<8x64xf32>, vector<64x32xf32>, vector<8x32xf32> -> vector<8x32xf32>
    %33 = arith.addf %10, %32 : vector<8x32xf32>
    %c8 = arith.constant 8 : index
    %c0_20 = arith.constant 0 : index
    %34 = vector.load %arg9[%c8, %c0_20] : memref<64x256xf32, #tpu.memory_space<vmem>>, vector<8x256xf32>
    %cst_21 = arith.constant dense<0.000000e+00> : vector<8x256xf32>
    %35 = tpu.matmul %29, %7, %cst_21 {dimension_numbers = #tpu.dot_dimension_numbers<[1], [0], [0], [1], [0, 0, 1, 1], [], []>} : vector<8x64xf32>, vector<64x256xf32>, vector<8x256xf32> -> vector<8x256xf32>
    %36 = arith.addf %34, %35 : vector<8x256xf32>
    %37 = vector.extract_strided_slice %36 {offsets = [0, 0], sizes = [8, 192], strides = [1, 1]} : vector<8x256xf32> to vector<8x192xf32>
    %38 = arith.negf %37 : vector<8x192xf32>
    %39 = math.exp %38 : vector<8x192xf32>
    %cst_22 = arith.constant 1.000000e+00 : f32
    %40 = vector.broadcast %cst_22 : f32 to vector<8x192xf32>
    %41 = arith.addf %40, %39 : vector<8x192xf32>
    %42 = arith.divf %40, %41 : vector<8x192xf32>
    %43 = vector.extract_strided_slice %36 {offsets = [0, 192], sizes = [8, 64], strides = [1, 1]} : vector<8x256xf32> to vector<8x64xf32>
    %44 = math.tanh %43 : vector<8x64xf32>
    %45 = vector.extract_strided_slice %42 {offsets = [0, 64], sizes = [8, 64], strides = [1, 1]} : vector<8x192xf32> to vector<8x64xf32>
    %46 = arith.mulf %45, %26 : vector<8x64xf32>
    %47 = vector.extract_strided_slice %42 {offsets = [0, 0], sizes = [8, 64], strides = [1, 1]} : vector<8x192xf32> to vector<8x64xf32>
    %48 = arith.mulf %47, %44 : vector<8x64xf32>
    %49 = arith.addf %46, %48 : vector<8x64xf32>
    %50 = vector.extract_strided_slice %42 {offsets = [0, 128], sizes = [8, 64], strides = [1, 1]} : vector<8x192xf32> to vector<8x64xf32>
    %51 = math.tanh %49 : vector<8x64xf32>
    %52 = arith.mulf %50, %51 : vector<8x64xf32>
    %c1 = arith.constant 1 : index
    %c0_23 = arith.constant 0 : index
    %c0_24 = arith.constant 0 : index
    %53 = vector.load %arg4[%c1, %c0_23, %c0_24] : memref<8x64x32xf32, #tpu.memory_space<vmem>>, vector<1x64x32xf32>
    %54 = vector.shape_cast %53 : vector<1x64x32xf32> to vector<64x32xf32>
    %cst_25 = arith.constant dense<0.000000e+00> : vector<8x32xf32>
    %55 = tpu.matmul %52, %54, %cst_25 {dimension_numbers = #tpu.dot_dimension_numbers<[1], [0], [0], [1], [0, 0, 1, 1], [], []>} : vector<8x64xf32>, vector<64x32xf32>, vector<8x32xf32> -> vector<8x32xf32>
    %56 = arith.addf %33, %55 : vector<8x32xf32>
    %c16 = arith.constant 16 : index
    %c0_26 = arith.constant 0 : index
    %57 = vector.load %arg9[%c16, %c0_26] : memref<64x256xf32, #tpu.memory_space<vmem>>, vector<8x256xf32>
    %cst_27 = arith.constant dense<0.000000e+00> : vector<8x256xf32>
    %58 = tpu.matmul %52, %7, %cst_27 {dimension_numbers = #tpu.dot_dimension_numbers<[1], [0], [0], [1], [0, 0, 1, 1], [], []>} : vector<8x64xf32>, vector<64x256xf32>, vector<8x256xf32> -> vector<8x256xf32>
    %59 = arith.addf %57, %58 : vector<8x256xf32>
    %60 = vector.extract_strided_slice %59 {offsets = [0, 0], sizes = [8, 192], strides = [1, 1]} : vector<8x256xf32> to vector<8x192xf32>
    %61 = arith.negf %60 : vector<8x192xf32>
    %62 = math.exp %61 : vector<8x192xf32>
    %cst_28 = arith.constant 1.000000e+00 : f32
    %63 = vector.broadcast %cst_28 : f32 to vector<8x192xf32>
    %64 = arith.addf %63, %62 : vector<8x192xf32>
    %65 = arith.divf %63, %64 : vector<8x192xf32>
    %66 = vector.extract_strided_slice %59 {offsets = [0, 192], sizes = [8, 64], strides = [1, 1]} : vector<8x256xf32> to vector<8x64xf32>
    %67 = math.tanh %66 : vector<8x64xf32>
    %68 = vector.extract_strided_slice %65 {offsets = [0, 64], sizes = [8, 64], strides = [1, 1]} : vector<8x192xf32> to vector<8x64xf32>
    %69 = arith.mulf %68, %49 : vector<8x64xf32>
    %70 = vector.extract_strided_slice %65 {offsets = [0, 0], sizes = [8, 64], strides = [1, 1]} : vector<8x192xf32> to vector<8x64xf32>
    %71 = arith.mulf %70, %67 : vector<8x64xf32>
    %72 = arith.addf %69, %71 : vector<8x64xf32>
    %73 = vector.extract_strided_slice %65 {offsets = [0, 128], sizes = [8, 64], strides = [1, 1]} : vector<8x192xf32> to vector<8x64xf32>
    %74 = math.tanh %72 : vector<8x64xf32>
    %75 = arith.mulf %73, %74 : vector<8x64xf32>
    %c2 = arith.constant 2 : index
    %c0_29 = arith.constant 0 : index
    %c0_30 = arith.constant 0 : index
    %76 = vector.load %arg4[%c2, %c0_29, %c0_30] : memref<8x64x32xf32, #tpu.memory_space<vmem>>, vector<1x64x32xf32>
    %77 = vector.shape_cast %76 : vector<1x64x32xf32> to vector<64x32xf32>
    %cst_31 = arith.constant dense<0.000000e+00> : vector<8x32xf32>
    %78 = tpu.matmul %75, %77, %cst_31 {dimension_numbers = #tpu.dot_dimension_numbers<[1], [0], [0], [1], [0, 0, 1, 1], [], []>} : vector<8x64xf32>, vector<64x32xf32>, vector<8x32xf32> -> vector<8x32xf32>
    %79 = arith.addf %56, %78 : vector<8x32xf32>
    %c24 = arith.constant 24 : index
    %c0_32 = arith.constant 0 : index
    %80 = vector.load %arg9[%c24, %c0_32] : memref<64x256xf32, #tpu.memory_space<vmem>>, vector<8x256xf32>
    %cst_33 = arith.constant dense<0.000000e+00> : vector<8x256xf32>
    %81 = tpu.matmul %75, %7, %cst_33 {dimension_numbers = #tpu.dot_dimension_numbers<[1], [0], [0], [1], [0, 0, 1, 1], [], []>} : vector<8x64xf32>, vector<64x256xf32>, vector<8x256xf32> -> vector<8x256xf32>
    %82 = arith.addf %80, %81 : vector<8x256xf32>
    %83 = vector.extract_strided_slice %82 {offsets = [0, 0], sizes = [8, 192], strides = [1, 1]} : vector<8x256xf32> to vector<8x192xf32>
    %84 = arith.negf %83 : vector<8x192xf32>
    %85 = math.exp %84 : vector<8x192xf32>
    %cst_34 = arith.constant 1.000000e+00 : f32
    %86 = vector.broadcast %cst_34 : f32 to vector<8x192xf32>
    %87 = arith.addf %86, %85 : vector<8x192xf32>
    %88 = arith.divf %86, %87 : vector<8x192xf32>
    %89 = vector.extract_strided_slice %82 {offsets = [0, 192], sizes = [8, 64], strides = [1, 1]} : vector<8x256xf32> to vector<8x64xf32>
    %90 = math.tanh %89 : vector<8x64xf32>
    %91 = vector.extract_strided_slice %88 {offsets = [0, 64], sizes = [8, 64], strides = [1, 1]} : vector<8x192xf32> to vector<8x64xf32>
    %92 = arith.mulf %91, %72 : vector<8x64xf32>
    %93 = vector.extract_strided_slice %88 {offsets = [0, 0], sizes = [8, 64], strides = [1, 1]} : vector<8x192xf32> to vector<8x64xf32>
    %94 = arith.mulf %93, %90 : vector<8x64xf32>
    %95 = arith.addf %92, %94 : vector<8x64xf32>
    %96 = vector.extract_strided_slice %88 {offsets = [0, 128], sizes = [8, 64], strides = [1, 1]} : vector<8x192xf32> to vector<8x64xf32>
    %97 = math.tanh %95 : vector<8x64xf32>
    %98 = arith.mulf %96, %97 : vector<8x64xf32>
    %c3 = arith.constant 3 : index
    %c0_35 = arith.constant 0 : index
    %c0_36 = arith.constant 0 : index
    %99 = vector.load %arg4[%c3, %c0_35, %c0_36] : memref<8x64x32xf32, #tpu.memory_space<vmem>>, vector<1x64x32xf32>
    %100 = vector.shape_cast %99 : vector<1x64x32xf32> to vector<64x32xf32>
    %cst_37 = arith.constant dense<0.000000e+00> : vector<8x32xf32>
    %101 = tpu.matmul %98, %100, %cst_37 {dimension_numbers = #tpu.dot_dimension_numbers<[1], [0], [0], [1], [0, 0, 1, 1], [], []>} : vector<8x64xf32>, vector<64x32xf32>, vector<8x32xf32> -> vector<8x32xf32>
    %102 = arith.addf %79, %101 : vector<8x32xf32>
    %c32 = arith.constant 32 : index
    %c0_38 = arith.constant 0 : index
    %103 = vector.load %arg9[%c32, %c0_38] : memref<64x256xf32, #tpu.memory_space<vmem>>, vector<8x256xf32>
    %cst_39 = arith.constant dense<0.000000e+00> : vector<8x256xf32>
    %104 = tpu.matmul %98, %7, %cst_39 {dimension_numbers = #tpu.dot_dimension_numbers<[1], [0], [0], [1], [0, 0, 1, 1], [], []>} : vector<8x64xf32>, vector<64x256xf32>, vector<8x256xf32> -> vector<8x256xf32>
    %105 = arith.addf %103, %104 : vector<8x256xf32>
    %106 = vector.extract_strided_slice %105 {offsets = [0, 0], sizes = [8, 192], strides = [1, 1]} : vector<8x256xf32> to vector<8x192xf32>
    %107 = arith.negf %106 : vector<8x192xf32>
    %108 = math.exp %107 : vector<8x192xf32>
    %cst_40 = arith.constant 1.000000e+00 : f32
    %109 = vector.broadcast %cst_40 : f32 to vector<8x192xf32>
    %110 = arith.addf %109, %108 : vector<8x192xf32>
    %111 = arith.divf %109, %110 : vector<8x192xf32>
    %112 = vector.extract_strided_slice %105 {offsets = [0, 192], sizes = [8, 64], strides = [1, 1]} : vector<8x256xf32> to vector<8x64xf32>
    %113 = math.tanh %112 : vector<8x64xf32>
    %114 = vector.extract_strided_slice %111 {offsets = [0, 64], sizes = [8, 64], strides = [1, 1]} : vector<8x192xf32> to vector<8x64xf32>
    %115 = arith.mulf %114, %95 : vector<8x64xf32>
    %116 = vector.extract_strided_slice %111 {offsets = [0, 0], sizes = [8, 64], strides = [1, 1]} : vector<8x192xf32> to vector<8x64xf32>
    %117 = arith.mulf %116, %113 : vector<8x64xf32>
    %118 = arith.addf %115, %117 : vector<8x64xf32>
    %119 = vector.extract_strided_slice %111 {offsets = [0, 128], sizes = [8, 64], strides = [1, 1]} : vector<8x192xf32> to vector<8x64xf32>
    %120 = math.tanh %118 : vector<8x64xf32>
    %121 = arith.mulf %119, %120 : vector<8x64xf32>
    %c4 = arith.constant 4 : index
    %c0_41 = arith.constant 0 : index
    %c0_42 = arith.constant 0 : index
    %122 = vector.load %arg4[%c4, %c0_41, %c0_42] : memref<8x64x32xf32, #tpu.memory_space<vmem>>, vector<1x64x32xf32>
    %123 = vector.shape_cast %122 : vector<1x64x32xf32> to vector<64x32xf32>
    %cst_43 = arith.constant dense<0.000000e+00> : vector<8x32xf32>
    %124 = tpu.matmul %121, %123, %cst_43 {dimension_numbers = #tpu.dot_dimension_numbers<[1], [0], [0], [1], [0, 0, 1, 1], [], []>} : vector<8x64xf32>, vector<64x32xf32>, vector<8x32xf32> -> vector<8x32xf32>
    %125 = arith.addf %102, %124 : vector<8x32xf32>
    %c40 = arith.constant 40 : index
    %c0_44 = arith.constant 0 : index
    %126 = vector.load %arg9[%c40, %c0_44] : memref<64x256xf32, #tpu.memory_space<vmem>>, vector<8x256xf32>
    %cst_45 = arith.constant dense<0.000000e+00> : vector<8x256xf32>
    %127 = tpu.matmul %121, %7, %cst_45 {dimension_numbers = #tpu.dot_dimension_numbers<[1], [0], [0], [1], [0, 0, 1, 1], [], []>} : vector<8x64xf32>, vector<64x256xf32>, vector<8x256xf32> -> vector<8x256xf32>
    %128 = arith.addf %126, %127 : vector<8x256xf32>
    %129 = vector.extract_strided_slice %128 {offsets = [0, 0], sizes = [8, 192], strides = [1, 1]} : vector<8x256xf32> to vector<8x192xf32>
    %130 = arith.negf %129 : vector<8x192xf32>
    %131 = math.exp %130 : vector<8x192xf32>
    %cst_46 = arith.constant 1.000000e+00 : f32
    %132 = vector.broadcast %cst_46 : f32 to vector<8x192xf32>
    %133 = arith.addf %132, %131 : vector<8x192xf32>
    %134 = arith.divf %132, %133 : vector<8x192xf32>
    %135 = vector.extract_strided_slice %128 {offsets = [0, 192], sizes = [8, 64], strides = [1, 1]} : vector<8x256xf32> to vector<8x64xf32>
    %136 = math.tanh %135 : vector<8x64xf32>
    %137 = vector.extract_strided_slice %134 {offsets = [0, 64], sizes = [8, 64], strides = [1, 1]} : vector<8x192xf32> to vector<8x64xf32>
    %138 = arith.mulf %137, %118 : vector<8x64xf32>
    %139 = vector.extract_strided_slice %134 {offsets = [0, 0], sizes = [8, 64], strides = [1, 1]} : vector<8x192xf32> to vector<8x64xf32>
    %140 = arith.mulf %139, %136 : vector<8x64xf32>
    %141 = arith.addf %138, %140 : vector<8x64xf32>
    %142 = vector.extract_strided_slice %134 {offsets = [0, 128], sizes = [8, 64], strides = [1, 1]} : vector<8x192xf32> to vector<8x64xf32>
    %143 = math.tanh %141 : vector<8x64xf32>
    %144 = arith.mulf %142, %143 : vector<8x64xf32>
    %c5 = arith.constant 5 : index
    %c0_47 = arith.constant 0 : index
    %c0_48 = arith.constant 0 : index
    %145 = vector.load %arg4[%c5, %c0_47, %c0_48] : memref<8x64x32xf32, #tpu.memory_space<vmem>>, vector<1x64x32xf32>
    %146 = vector.shape_cast %145 : vector<1x64x32xf32> to vector<64x32xf32>
    %cst_49 = arith.constant dense<0.000000e+00> : vector<8x32xf32>
    %147 = tpu.matmul %144, %146, %cst_49 {dimension_numbers = #tpu.dot_dimension_numbers<[1], [0], [0], [1], [0, 0, 1, 1], [], []>} : vector<8x64xf32>, vector<64x32xf32>, vector<8x32xf32> -> vector<8x32xf32>
    %148 = arith.addf %125, %147 : vector<8x32xf32>
    %c48 = arith.constant 48 : index
    %c0_50 = arith.constant 0 : index
    %149 = vector.load %arg9[%c48, %c0_50] : memref<64x256xf32, #tpu.memory_space<vmem>>, vector<8x256xf32>
    %cst_51 = arith.constant dense<0.000000e+00> : vector<8x256xf32>
    %150 = tpu.matmul %144, %7, %cst_51 {dimension_numbers = #tpu.dot_dimension_numbers<[1], [0], [0], [1], [0, 0, 1, 1], [], []>} : vector<8x64xf32>, vector<64x256xf32>, vector<8x256xf32> -> vector<8x256xf32>
    %151 = arith.addf %149, %150 : vector<8x256xf32>
    %152 = vector.extract_strided_slice %151 {offsets = [0, 0], sizes = [8, 192], strides = [1, 1]} : vector<8x256xf32> to vector<8x192xf32>
    %153 = arith.negf %152 : vector<8x192xf32>
    %154 = math.exp %153 : vector<8x192xf32>
    %cst_52 = arith.constant 1.000000e+00 : f32
    %155 = vector.broadcast %cst_52 : f32 to vector<8x192xf32>
    %156 = arith.addf %155, %154 : vector<8x192xf32>
    %157 = arith.divf %155, %156 : vector<8x192xf32>
    %158 = vector.extract_strided_slice %151 {offsets = [0, 192], sizes = [8, 64], strides = [1, 1]} : vector<8x256xf32> to vector<8x64xf32>
    %159 = math.tanh %158 : vector<8x64xf32>
    %160 = vector.extract_strided_slice %157 {offsets = [0, 64], sizes = [8, 64], strides = [1, 1]} : vector<8x192xf32> to vector<8x64xf32>
    %161 = arith.mulf %160, %141 : vector<8x64xf32>
    %162 = vector.extract_strided_slice %157 {offsets = [0, 0], sizes = [8, 64], strides = [1, 1]} : vector<8x192xf32> to vector<8x64xf32>
    %163 = arith.mulf %162, %159 : vector<8x64xf32>
    %164 = arith.addf %161, %163 : vector<8x64xf32>
    %165 = vector.extract_strided_slice %157 {offsets = [0, 128], sizes = [8, 64], strides = [1, 1]} : vector<8x192xf32> to vector<8x64xf32>
    %166 = math.tanh %164 : vector<8x64xf32>
    %167 = arith.mulf %165, %166 : vector<8x64xf32>
    %c6 = arith.constant 6 : index
    %c0_53 = arith.constant 0 : index
    %c0_54 = arith.constant 0 : index
    %168 = vector.load %arg4[%c6, %c0_53, %c0_54] : memref<8x64x32xf32, #tpu.memory_space<vmem>>, vector<1x64x32xf32>
    %169 = vector.shape_cast %168 : vector<1x64x32xf32> to vector<64x32xf32>
    %cst_55 = arith.constant dense<0.000000e+00> : vector<8x32xf32>
    %170 = tpu.matmul %167, %169, %cst_55 {dimension_numbers = #tpu.dot_dimension_numbers<[1], [0], [0], [1], [0, 0, 1, 1], [], []>} : vector<8x64xf32>, vector<64x32xf32>, vector<8x32xf32> -> vector<8x32xf32>
    %171 = arith.addf %148, %170 : vector<8x32xf32>
    %c56 = arith.constant 56 : index
    %c0_56 = arith.constant 0 : index
    %172 = vector.load %arg9[%c56, %c0_56] : memref<64x256xf32, #tpu.memory_space<vmem>>, vector<8x256xf32>
    %cst_57 = arith.constant dense<0.000000e+00> : vector<8x256xf32>
    %173 = tpu.matmul %167, %7, %cst_57 {dimension_numbers = #tpu.dot_dimension_numbers<[1], [0], [0], [1], [0, 0, 1, 1], [], []>} : vector<8x64xf32>, vector<64x256xf32>, vector<8x256xf32> -> vector<8x256xf32>
    %174 = arith.addf %172, %173 : vector<8x256xf32>
    %175 = vector.extract_strided_slice %174 {offsets = [0, 0], sizes = [8, 192], strides = [1, 1]} : vector<8x256xf32> to vector<8x192xf32>
    %176 = arith.negf %175 : vector<8x192xf32>
    %177 = math.exp %176 : vector<8x192xf32>
    %cst_58 = arith.constant 1.000000e+00 : f32
    %178 = vector.broadcast %cst_58 : f32 to vector<8x192xf32>
    %179 = arith.addf %178, %177 : vector<8x192xf32>
    %180 = arith.divf %178, %179 : vector<8x192xf32>
    %181 = vector.extract_strided_slice %174 {offsets = [0, 192], sizes = [8, 64], strides = [1, 1]} : vector<8x256xf32> to vector<8x64xf32>
    %182 = math.tanh %181 : vector<8x64xf32>
    %183 = vector.extract_strided_slice %180 {offsets = [0, 64], sizes = [8, 64], strides = [1, 1]} : vector<8x192xf32> to vector<8x64xf32>
    %184 = arith.mulf %183, %164 : vector<8x64xf32>
    %185 = vector.extract_strided_slice %180 {offsets = [0, 0], sizes = [8, 64], strides = [1, 1]} : vector<8x192xf32> to vector<8x64xf32>
    %186 = arith.mulf %185, %182 : vector<8x64xf32>
    %187 = arith.addf %184, %186 : vector<8x64xf32>
    %188 = vector.extract_strided_slice %180 {offsets = [0, 128], sizes = [8, 64], strides = [1, 1]} : vector<8x192xf32> to vector<8x64xf32>
    %189 = math.tanh %187 : vector<8x64xf32>
    %190 = arith.mulf %188, %189 : vector<8x64xf32>
    %c7 = arith.constant 7 : index
    %c0_59 = arith.constant 0 : index
    %c0_60 = arith.constant 0 : index
    %191 = vector.load %arg4[%c7, %c0_59, %c0_60] : memref<8x64x32xf32, #tpu.memory_space<vmem>>, vector<1x64x32xf32>
    %192 = vector.shape_cast %191 : vector<1x64x32xf32> to vector<64x32xf32>
    %cst_61 = arith.constant dense<0.000000e+00> : vector<8x32xf32>
    %193 = tpu.matmul %190, %192, %cst_61 {dimension_numbers = #tpu.dot_dimension_numbers<[1], [0], [0], [1], [0, 0, 1, 1], [], []>} : vector<8x64xf32>, vector<64x32xf32>, vector<8x32xf32> -> vector<8x32xf32>
    %194 = arith.addf %171, %193 : vector<8x32xf32>
    %c0_62 = arith.constant 0 : index
    %c0_63 = arith.constant 0 : index
    %195 = vector.load %arg5[%c0_62, %c0_63] : memref<1x32xf32, #tpu.memory_space<vmem>>, vector<1x32xf32>
    %196 = vector.broadcast %195 : vector<1x32xf32> to vector<8x32xf32>
    %197 = arith.addf %194, %196 : vector<8x32xf32>
    %c0_64 = arith.constant 0 : index
    %c0_65 = arith.constant 0 : index
    %198 = vector.load %arg6[%c0_64, %c0_65] : memref<32x4xf32, #tpu.memory_space<vmem>>, vector<32x4xf32>
    %cst_66 = arith.constant dense<0.000000e+00> : vector<8x4xf32>
    %199 = tpu.matmul %197, %198, %cst_66 {dimension_numbers = #tpu.dot_dimension_numbers<[1], [0], [0], [1], [0, 0, 1, 1], [], []>} : vector<8x32xf32>, vector<32x4xf32>, vector<8x4xf32> -> vector<8x4xf32>
    %c0_67 = arith.constant 0 : index
    %c0_68 = arith.constant 0 : index
    %200 = vector.load %arg7[%c0_67, %c0_68] : memref<1x4xf32, #tpu.memory_space<vmem>>, vector<1x4xf32>
    %201 = vector.broadcast %200 : vector<1x4xf32> to vector<8x4xf32>
    %202 = arith.addf %199, %201 : vector<8x4xf32>
    %203 = arith.negf %202 : vector<8x4xf32>
    %204 = math.exp %203 : vector<8x4xf32>
    %cst_69 = arith.constant 1.000000e+00 : f32
    %205 = vector.broadcast %cst_69 : f32 to vector<8x4xf32>
    %206 = arith.addf %205, %204 : vector<8x4xf32>
    %207 = arith.divf %205, %206 : vector<8x4xf32>
    %c0_70 = arith.constant 0 : index
    %c0_71 = arith.constant 0 : index
    %208 = vector.load %arg8[%c0_70, %c0_71] : memref<8x4xf32, #tpu.memory_space<vmem>>, vector<8x4xf32>
    tpu.vector_store %arg8[%c0_70, %c0_71], %207 {strides = array<i32>} : memref<8x4xf32, #tpu.memory_space<vmem>>, vector<8x4xf32>,
    return
  }
}

</mosaic_0001>

<bundles_post_ra>
// kernel: tpu_custom_call.1
= control target key start
LH: loop header
LB: loop body
LE: loop exit
PB: predicated region body
PF: predicated region fallthrough
CT: control target
= control target key end

     0   :  { %vm45_vm0 = vcmask 64512   ;;  %v1543_v19 = vmov 0.0   ;;  %s1544_s22 = smov 64   ;;  %vm186_vm9 = vcmask 523264   ;;  %s2250_s3 = inlined_call_operand.vmem [shape: f32[64,256], index: 3, kind: input, shape index: {}]   ;;  %s2251_s1 = inlined_call_operand.vmem [shape: f32[8,256], index: 1, kind: input, shape index: {}]   ;;  %s2252_s0 = inlined_call_operand.vmem [shape: f32[64,8], index: 0, kind: input, shape index: {}]   ;;  %s2253_s2 = inlined_call_operand.vmem [shape: f32[1,256], index: 2, kind: input, shape index: {}]   ;;  %s2254_s4 = inlined_call_operand.vmem [shape: f32[8,64,32], index: 4, kind: input, shape index: {}]   ;;  %s2255_s5 = inlined_call_operand.vmem [shape: f32[1,32], index: 5, kind: input, shape index: {}]   ;;  %s2256_s6 = inlined_call_operand.vmem [shape: f32[32,4], index: 6, kind: input, shape index: {}]   ;;  %s2257_s7 = inlined_call_operand.vmem [shape: f32[1,4], index: 7, kind: input, shape index: {}]   ;;  %s2258_s8 = inlined_call_operand.vmem [shape: f32[8,4], index: 8, kind: output, shape index: {}]  }
   0x1   :  { %v1593_v0 = vld [vmem:[%s2250_s3 + $0x78] sm:$0xff]  ;;  %v1598_v1 = vld [vmem:[%s2250_s3 + $0x68] sm:$0xff]  ;;  %v29_v4 = vld [vmem:[%s2252_s0] sm:$0xff] }
   0x2   :  { %218 = vmatpush.msra.mxu3 %v1593_v0  ;;  %v1604_v2 = vld [vmem:[%s2250_s3 + $0x58] sm:$0xff]  ;;  %v38_v3 = vld [vmem:[%s2251_s1 + $0x8] sm:$0xff]  ;;  %v1616_v5 = vld [vmem:[%s2250_s3 + $0x70] sm:$0xff] }
   0x3   :  { %126 = vmatpush.msra.mxu1 %v38_v3  ;;  %v1621_v6 = vld [vmem:[%s2250_s3 + $0x60] sm:$0xff]  ;;  %v1626_v7 = vld [vmem:[%s2250_s3 + $0x48] sm:$0xff]  ;;  %198 = vmatpush.msra.mxu2 %v1616_v5  ;;  %v1634_v8 = vld [vmem:[%s2250_s3 + $0x50] sm:$0xff] }
   0x4   :  { %219 = vmatpush.msra.mxu3 %v1598_v1  ;;  %1319 = vmatmul.msk.f32.vlgmr.msra.gmra.mxu1 %vm45_vm0, %v29_v4  ;;  %v1640_v9 = vld [vmem:[%s2250_s3 + $0x38] sm:$0xff]  ;;  %v37_v10 = vld [vmem:[%s2251_s1] sm:$0xff]  ;;  %v1655_v12 = vld [vmem:[%s2250_s3 + $0x28] sm:$0xff] }
   0x5   :  { %594 = vmatpush.msrb.mxu1 %v1616_v5  ;;  %199 = vmatpush.msra.mxu2 %v1621_v6  ;;  %v1650_v11 = vld [vmem:[%s2250_s3 + $0x40] sm:$0xff]  ;;  %v1663_v13 = vld [vmem:[%s2250_s3 + $0x30] sm:$0xff]  ;;  %v1669_v14 = vld [vmem:[%s2250_s3 + $0x18] sm:$0xff] }
   0x6   :  { %220 = vmatpush.msra.mxu3 %v1604_v2  ;;  %85 = vmatpush.msra.mxu0 %v37_v10  ;;  %v1676_v15 = vld [vmem:[%s2250_s3 + $0x20] sm:$0xff]  ;;  %v1682_v16 = vld [vmem:[%s2250_s3 + $0x8] sm:$0xff]  ;;  %v1689_v17 = vld [vmem:[%s2250_s3 + $0x10] sm:$0xff] }
   0x7   :  { %200 = vmatpush.msra.mxu2 %v1634_v8  ;;  %1311 = vmatmul.msk.f32.vlgmr.msra.gmra.mxu0 %vm45_vm0, %v29_v4  ;;  %v1697_v18 = vld [vmem:[%s2250_s3] sm:$0xff]  ;;  %v295_v47 = vld [vmem:[%s2254_s4 + $0x38] sm:$0xff]  ;;  %v294_v48 = vld [vmem:[%s2254_s4 + $0x30] sm:$0xff] }
   0x8   :  { %221 = vmatpush.msra.mxu3 %v1626_v7  ;;  %595 = vmatpush.msrb.mxu1 %v1621_v6  ;;  %v39_v20 = vld [vmem:[%s2253_s2] sm:$0x3]  ;;  %v293_v49 = vld [vmem:[%s2254_s4 + $0x28] sm:$0xff]  ;;  %v291_v58 = vld [vmem:[%s2254_s4 + $0x18] sm:$0xff] }
   0x9   :  { %201 = vmatpush.msra.mxu2 %v1650_v11  ;;  %v1732_v21 = vperm.slane %v39_v20, 1  ;;  %v1736_v27 = vperm.slane %v39_v20, 0  ;;  %v292_v57 = vld [vmem:[%s2254_s4 + $0x20] sm:$0xff]  ;;  %v290_v59 = vld [vmem:[%s2254_s4 + $0x10] sm:$0xff]  ;;  %v30_v60 = vld [vmem:[%s2252_s0 + $0x8] sm:$0xff] }
   0xa   :  { %222 = vmatpush.msra.mxu3 %v1640_v9  ;;  %596 = vmatpush.msrb.mxu1 %v1634_v8  ;;  %v289_v61 = vld [vmem:[%s2254_s4 + $0x8] sm:$0xff]  ;;  %v288_v62 = vld [vmem:[%s2254_s4] sm:$0xff] }
   0xb   :  { %202 = vmatpush.msra.mxu2 %v1663_v13 }
   0xc   :  { %223 = vmatpush.msra.mxu3 %v1655_v12  ;;  %597 = vmatpush.msrb.mxu1 %v1650_v11 }
   0xd   :  { %203 = vmatpush.msra.mxu2 %v1676_v15  ;;  %1320 = vmatmul.msk.f32.gmra.mxu1 %vm45_vm0, %v30_v60 }
   0xe   :  { %224 = vmatpush.msra.mxu3 %v1669_v14  ;;  %598 = vmatpush.msrb.mxu1 %v1663_v13 }
   0xf   :  { %204 = vmatpush.msra.mxu2 %v1689_v17  ;;  %1312 = vmatmul.msk.f32.gmra.mxu0 %vm45_vm0, %v30_v60  ;;  %v1334_v60 = vld [vmem:[%s2254_s4 + $0x48] sm:$0xff] }
  0x10   :  { %225 = vmatpush.msra.mxu3 %v1682_v16  ;;  %599 = vmatpush.msrb.mxu1 %v1676_v15 }
  0x11   :  { %226 = vmatmul.f32.vlgmr.msra.gmra.mxu3 %v1543_v19  ;;  %205 = vmatpush.msra.mxu2 %v1697_v18 }
  0x12   :  { %329 = vmatpush.msrb.mxu3 %v1593_v0  ;;  %206 = vmatmul.f32.vlgmr.msra.gmra.mxu2 %v1543_v19 }
  0x13   :  { %309 = vmatpush.msrb.mxu2 %v1616_v5  ;;  %600 = vmatpush.msrb.mxu1 %v1689_v17 }
  0x14   :  { %330 = vmatpush.msrb.mxu3 %v1598_v1 }
  0x15   :  { %310 = vmatpush.msrb.mxu2 %v1621_v6  ;;  %601 = vmatpush.msrb.mxu1 %v1697_v18 }
  0x16   :  { %331 = vmatpush.msrb.mxu3 %v1604_v2 }
  0x17   :  { %747 = vmatpush.msra.mxu1 %v1593_v0  ;;  %311 = vmatpush.msrb.mxu2 %v1634_v8 }
  0x18   :  { %332 = vmatpush.msrb.mxu3 %v1626_v7 }
  0x19   :  { %748 = vmatpush.msra.mxu1 %v1598_v1  ;;  %312 = vmatpush.msrb.mxu2 %v1650_v11 }
  0x1a   :  { %333 = vmatpush.msrb.mxu3 %v1640_v9 }
  0x1b   :  { %749 = vmatpush.msra.mxu1 %v1604_v2  ;;  %313 = vmatpush.msrb.mxu2 %v1663_v13 }
  0x1c   :  { %334 = vmatpush.msrb.mxu3 %v1655_v12 }
  0x1d   :  { %750 = vmatpush.msra.mxu1 %v1626_v7  ;;  %314 = vmatpush.msrb.mxu2 %v1676_v15 }
  0x1e   :  { %335 = vmatpush.msrb.mxu3 %v1669_v14 }
  0x1f   :  { %751 = vmatpush.msra.mxu1 %v1640_v9  ;;  %315 = vmatpush.msrb.mxu2 %v1689_v17 }
  0x20   :  { %336 = vmatpush.msrb.mxu3 %v1682_v16 }
  0x21   :  { %752 = vmatpush.msra.mxu1 %v1655_v12  ;;  %316 = vmatpush.msrb.mxu2 %v1697_v18 }
  0x22   :  { %439 = vmatpush.msra.mxu3 %v295_v47 }
  0x23   :  { %753 = vmatpush.msra.mxu1 %v1669_v14 }
  0x24   :  { %440 = vmatpush.msra.mxu3 %v294_v48 }
  0x25   :  { %754 = vmatpush.msra.mxu1 %v1682_v16 }
  0x26   :  { %441 = vmatpush.msra.mxu3 %v293_v49 }
  0x28   :  { %442 = vmatpush.msra.mxu3 %v292_v57  ;;  %v1337_v57 = vld [vmem:[%s2254_s4 + $0x60] sm:$0xff] }
  0x2a   :  { %443 = vmatpush.msra.mxu3 %v291_v58  ;;  %v1336_v58 = vld [vmem:[%s2254_s4 + $0x58] sm:$0xff] }
  0x2c   :  { %444 = vmatpush.msra.mxu3 %v290_v59  ;;  %v1335_v59 = vld [vmem:[%s2254_s4 + $0x50] sm:$0xff] }
  0x2e   :  { %445 = vmatpush.msra.mxu3 %v289_v61  ;;  %v1333_v61 = vld [vmem:[%s2254_s4 + $0x40] sm:$0xff] }
  0x30   :  { %446 = vmatpush.msra.mxu3 %v288_v62 }
  0x81   :  { %v128_v22 = vpop.f32.mrf.mxu1 }
  0x82   :  { %v129_v23 = vadd.f32 %v128_v22, %v1732_v21 }
  0x84   :  { %v87_v28 = vpop.f32.mrf.mxu0 }
  0x85   :  { %v88_v29 = vadd.f32 %v87_v28, %v1736_v27 }
  0x94   :  { %v227_v24 = vpop.f32.mrf.mxu3 }
  0x95   :  { %v231_v25 = vadd.f32 %v227_v24, %v129_v23  ;;  %v207_v30 = vpop.f32.mrf.mxu2 }
  0x96   :  { %v230_v31 = vadd.f32 %v207_v30, %v88_v29  ;;  %v131_v29 = vpop.f32.mrf.mxu1 }
  0x97   :  { %1427 = vtanh.f32 %v231_v25  ;;  %v1328_v54 = vmul.f32 -1.442695, %v231_v25  ;;  %v132_v30 = vadd.f32 %v131_v29, %v1732_v21 }
  0x98   :  { %v1327_v32 = vmul.f32 -1.442695, %v230_v31 }
  0x9a   :  { %1429 = vpow2.f32 %v1327_v32 }
  0x9d   :  { %v1428_v26 = vpop.eup %1427 }
  0x9e   :  { %273 = vrot.lane.b32.xlu0 %v1428_v26, %s1544_s22 }
  0xa0   :  { %v1430_v33 = vpop.eup %1429 }
  0xa1   :  { %v238_v34 = vadd.f32 1.0, %v1430_v33 }
  0xa3   :  { %1431 = vrcp.f32 %v238_v34  ;;  %vm245_vm1 = vweird.f32 %v238_v34  ;;  %v251_v39 = vand.u32 2147483648, %v238_v34  ;;  %v249_v41 = vand.u32 2147483647, %v238_v34 }
  0xa5   :  { %v252_v42 = vor.u32 1.1754944e-38, %v251_v39  ;;  %vm250_vm4 = vcmp.eq.f32.partialorder %v249_v41, 8.507059e+37 }
  0xa9   :  { %v1432_v35 = vpop.eup %1431 }
  0xaa   :  { %v241_v36 = vmul.f32 %v1432_v35, %v238_v34  ;;  %vm246_vm2 = vweird.f32 %v1432_v35  ;;  %v90_v34 = vpop.f32.mrf.mxu0 }
  0xab   :  { %vm247_vm3 = vmor %vm245_vm1, %vm246_vm2 }
  0xac   :  { %v242_v37 = vsub.f32 1.0, %v241_v36 }
  0xae   :  { %v243_v38 = vmul.f32 %v1432_v35, %v242_v37 }
  0xb0   :  { %v244_v40 = vadd.f32 %v1432_v35, %v243_v38 }
  0xb2   :  { %v248_v43 = vsel %vm247_vm3, %v1432_v35, %v244_v40  ;;  %v91_v35 = vadd.f32 %v90_v34, %v1736_v27 }
  0xb3   :  { %v253_v45 = vsel %vm250_vm4, %v252_v42, %v248_v43 }
  0xb4   :  { %v271_v50 = vmul.f32 0.0, %v253_v45 }
 0x110   :  { %v274_v44 = vpop.permute.xlu0 %273 }
 0x111   :  { %v276_v46 = vmul.f32 %v274_v44, %v253_v45 }
 0x113   :  { %278 = vrot.lane.b32.xlu0 %v276_v46, %s1544_s22 }
 0x185   :  { %v279_v51 = vpop.permute.xlu0 %278 }
 0x186   :  { %v1749_v52 = vadd.f32 %v279_v51, %v271_v50 }
 0x188   :  { %1433 = vtanh.f32 %v1749_v52 }
 0x189   :  { %1435 = vpow2.f32 %v1328_v54  ;;  %v1340_v54 = vld [vmem:[%s2254_s4 + $0x78] sm:$0xff] }
 0x18a   :  { %419 = vmatpush.msra.mxu2 %v1340_v54 }
 0x18e   :  { %v1434_v53 = vpop.eup %1433 }
 0x18f   :  { %284 = vrot.lane.b32.xlu1 %v1434_v53, %s1544_s22  ;;  %v1436_v55 = vpop.eup %1435 }
 0x190   :  { %v239_v56 = vadd.f32 1.0, %v1436_v55  ;;  %v1339_v55 = vld [vmem:[%s2254_s4 + $0x70] sm:$0xff] }
 0x191   :  { %420 = vmatpush.msra.mxu2 %v1339_v55 }
 0x192   :  { %1437 = vrcp.f32 %v239_v56  ;;  %v266_v20 = vand.u32 2147483648, %v239_v56  ;;  %vm260_vm6 = vweird.f32 %v239_v56  ;;  %v264_v22 = vand.u32 2147483647, %v239_v56 }
 0x194   :  { %v267_v24 = vor.u32 1.1754944e-38, %v266_v20  ;;  %vm265_vm8 = vcmp.eq.f32.partialorder %v264_v22, 8.507059e+37  ;;  %v31_v20 = vld [vmem:[%s2252_s0 + $0x10] sm:$0xff] }
 0x195   :  { %1321 = vmatmul.msk.f32.gmra.mxu1 %vm45_vm0, %v31_v20  ;;  %1313 = vmatmul.msk.f32.gmra.mxu0 %vm45_vm0, %v31_v20  ;;  %v33_v20 = vld [vmem:[%s2252_s0 + $0x20] sm:$0xff] }
 0x198   :  { %v1438_v63 = vpop.eup %1437 }
 0x199   :  { %v256_v3 = vmul.f32 %v1438_v63, %v239_v56  ;;  %vm261_vm5 = vweird.f32 %v1438_v63  ;;  %v1338_v56 = vld [vmem:[%s2254_s4 + $0x68] sm:$0xff] }
 0x19a   :  { %vm262_vm7 = vmor %vm260_vm6, %vm261_vm5  ;;  %421 = vmatpush.msra.mxu2 %v1338_v56 }
 0x19b   :  { %v257_v4 = vsub.f32 1.0, %v256_v3 }
 0x19c   :  { %422 = vmatpush.msra.mxu2 %v1337_v57 }
 0x19d   :  { %v258_v10 = vmul.f32 %v1438_v63, %v257_v4 }
 0x19e   :  { %423 = vmatpush.msra.mxu2 %v1336_v58 }
 0x19f   :  { %v259_v19 = vadd.f32 %v1438_v63, %v258_v10 }
 0x1a0   :  { %424 = vmatpush.msra.mxu2 %v1335_v59 }
 0x1a1   :  { %v263_v23 = vsel %vm262_vm7, %v1438_v63, %v259_v19 }
 0x1a2   :  { %v268_v25 = vsel %vm265_vm8, %v267_v24, %v263_v23  ;;  %425 = vmatpush.msra.mxu2 %v1334_v60 }
 0x1a4   :  { %426 = vmatpush.msra.mxu2 %v1333_v61 }
 0x201   :  { %v285_v26 = vpop.permute.xlu1 %284 }
 0x202   :  { %v287_v28 = vmul.f32 %v285_v26, %v268_v25 }
 0x204   :  { %1329 = vmatmul.msk.f32.vlgmr.msrb.gmra.mxu2 %vm186_vm9, %v287_v28  ;;  %1330 = vmatmul.msk.f32.vlgmr.msrb.gmra.mxu3 %vm186_vm9, %v287_v28 }
 0x205   :  { %481 = vmatpush.msrb.mxu3 %v1593_v0  ;;  %461 = vmatpush.msrb.mxu2 %v1616_v5 }
 0x207   :  { %482 = vmatpush.msrb.mxu3 %v1598_v1  ;;  %462 = vmatpush.msrb.mxu2 %v1621_v6 }
 0x209   :  { %483 = vmatpush.msrb.mxu3 %v1604_v2  ;;  %463 = vmatpush.msrb.mxu2 %v1634_v8 }
 0x20b   :  { %484 = vmatpush.msrb.mxu3 %v1626_v7  ;;  %464 = vmatpush.msrb.mxu2 %v1650_v11 }
 0x20c   :  { %1342 = vmatmul.msk.f32.vlgmr.msra.gmra.mxu3 %vm186_vm9, %v287_v28 }
 0x20d   :  { %485 = vmatpush.msrb.mxu3 %v1640_v9  ;;  %465 = vmatpush.msrb.mxu2 %v1663_v13 }
 0x20f   :  { %486 = vmatpush.msrb.mxu3 %v1655_v12  ;;  %466 = vmatpush.msrb.mxu2 %v1676_v15 }
 0x211   :  { %487 = vmatpush.msrb.mxu3 %v1669_v14  ;;  %467 = vmatpush.msrb.mxu2 %v1689_v17 }
 0x213   :  { %488 = vmatpush.msrb.mxu3 %v1682_v16  ;;  %468 = vmatpush.msrb.mxu2 %v1697_v18 }
 0x287   :  { %v338_v31 = vpop.f32.mrf.mxu3  ;;  %v318_v36 = vpop.f32.mrf.mxu2 }
 0x288   :  { %v342_v32 = vadd.f32 %v338_v31, %v132_v30  ;;  %v341_v37 = vadd.f32 %v318_v36, %v91_v35  ;;  %v134_v36 = vpop.f32.mrf.mxu1 }
 0x28a   :  { %1439 = vtanh.f32 %v342_v32  ;;  %v1331_v38 = vmul.f32 -1.442695, %v341_v37  ;;  %v1332_v10 = vmul.f32 -1.442695, %v342_v32  ;;  %v135_v37 = vadd.f32 %v134_v36, %v1732_v21 }
 0x28c   :  { %1441 = vpow2.f32 %v1331_v38 }
 0x28f   :  { %v448_v35 = vpop.f32.mrf.mxu3 }
 0x290   :  { %v1440_v33 = vpop.eup %1439 }
 0x291   :  { %384 = vrot.lane.b32.xlu1 %v1440_v33, %s1544_s22 }
 0x292   :  { %v1442_v39 = vpop.eup %1441 }
 0x293   :  { %v349_v40 = vadd.f32 1.0, %v1442_v39 }
 0x295   :  { %1443 = vrcp.f32 %v349_v40  ;;  %v362_v46 = vand.u32 2147483648, %v349_v40  ;;  %vm356_vm11 = vweird.f32 %v349_v40  ;;  %v360_v47 = vand.u32 2147483647, %v349_v40 }
 0x297   :  { %v363_v49 = vor.u32 1.1754944e-38, %v362_v46  ;;  %vm361_vm13 = vcmp.eq.f32.partialorder %v360_v47, 8.507059e+37 }
 0x29b   :  { %v1444_v41 = vpop.eup %1443 }
 0x29c   :  { %v352_v42 = vmul.f32 %v1444_v41, %v349_v40  ;;  %vm357_vm10 = vweird.f32 %v1444_v41 }
 0x29d   :  { %vm358_vm12 = vmor %vm356_vm11, %vm357_vm10 }
 0x29e   :  { %v353_v43 = vsub.f32 1.0, %v352_v42 }
 0x2a0   :  { %v354_v44 = vmul.f32 %v1444_v41, %v353_v43  ;;  %v93_v43 = vpop.f32.mrf.mxu0 }
 0x2a2   :  { %v355_v45 = vadd.f32 %v1444_v41, %v354_v44  ;;  %v94_v44 = vadd.f32 %v93_v43, %v1736_v27 }
 0x2a4   :  { %v359_v48 = vsel %vm358_vm12, %v1444_v41, %v355_v45 }
 0x2a5   :  { %v364_v51 = vsel %vm361_vm13, %v363_v49, %v359_v48 }
 0x2a6   :  { %v382_v62 = vmul.f32 %v364_v51, %v1749_v52 }
 0x303   :  { %v385_v50 = vpop.permute.xlu1 %384 }
 0x304   :  { %v387_v53 = vmul.f32 %v385_v50, %v364_v51 }
 0x306   :  { %389 = vrot.lane.b32.xlu2 %v387_v53, %s1544_s22 }
 0x360   :  { %v390_v63 = vpop.permute.xlu2 %389 }
 0x361   :  { %v1817_v3 = vadd.f32 %v390_v63, %v382_v62  ;;  %v32_v63 = vld [vmem:[%s2252_s0 + $0x18] sm:$0xff] }
 0x362   :  { %1314 = vmatmul.msk.f32.gmra.mxu0 %vm45_vm0, %v32_v63  ;;  %1322 = vmatmul.msk.f32.gmra.mxu1 %vm45_vm0, %v32_v63 }
 0x363   :  { %1445 = vtanh.f32 %v1817_v3 }
 0x364   :  { %1447 = vpow2.f32 %v1332_v10  ;;  %v1353_v10 = vld [vmem:[%s2254_s4 + $0xb0] sm:$0xff] }
 0x369   :  { %v1446_v4 = vpop.eup %1445 }
 0x36a   :  { %395 = vrot.lane.b32.xlu2 %v1446_v4, %s1544_s22  ;;  %v1448_v52 = vpop.eup %1447  ;;  %v1354_v4 = vld [vmem:[%s2254_s4 + $0xb8] sm:$0xff]  ;;  %1315 = vmatmul.msk.f32.gmra.mxu0 %vm45_vm0, %v33_v20 }
 0x36b   :  { %v350_v19 = vadd.f32 1.0, %v1448_v52  ;;  %571 = vmatpush.msrb.mxu0 %v1354_v4  ;;  %v1352_v52 = vld [vmem:[%s2254_s4 + $0xa8] sm:$0xff]  ;;  %1323 = vmatmul.msk.f32.gmra.mxu1 %vm45_vm0, %v33_v20 }
 0x36d   :  { %1449 = vrcp.f32 %v350_v19  ;;  %v377_v28 = vand.u32 2147483648, %v350_v19  ;;  %vm371_vm15 = vweird.f32 %v350_v19  ;;  %v375_v29 = vand.u32 2147483647, %v350_v19  ;;  %572 = vmatpush.msrb.mxu0 %v1353_v10 }
 0x36f   :  { %v378_v31 = vor.u32 1.1754944e-38, %v377_v28  ;;  %vm376_vm2 = vcmp.eq.f32.partialorder %v375_v29, 8.507059e+37  ;;  %573 = vmatpush.msrb.mxu0 %v1352_v52  ;;  %v35_v29 = vld [vmem:[%s2252_s0 + $0x30] sm:$0xff] }
 0x373   :  { %v1450_v22 = vpop.eup %1449 }
 0x374   :  { %v367_v23 = vmul.f32 %v1450_v22, %v350_v19  ;;  %vm372_vm14 = vweird.f32 %v1450_v22  ;;  %v1351_v19 = vld [vmem:[%s2254_s4 + $0xa0] sm:$0xff] }
 0x375   :  { %vm373_vm1 = vmor %vm371_vm15, %vm372_vm14  ;;  %574 = vmatpush.msrb.mxu0 %v1351_v19 }
 0x376   :  { %v368_v24 = vsub.f32 1.0, %v367_v23  ;;  %v1349_v23 = vld [vmem:[%s2254_s4 + $0x90] sm:$0xff] }
 0x378   :  { %v369_v25 = vmul.f32 %v1450_v22, %v368_v24  ;;  %v1348_v24 = vld [vmem:[%s2254_s4 + $0x88] sm:$0xff] }
 0x37a   :  { %v370_v26 = vadd.f32 %v1450_v22, %v369_v25  ;;  %v34_v25 = vld [vmem:[%s2252_s0 + $0x28] sm:$0xff] }
 0x37b   :  { %1316 = vmatmul.msk.f32.gmra.mxu0 %vm45_vm0, %v34_v25  ;;  %1324 = vmatmul.msk.f32.gmra.mxu1 %vm45_vm0, %v34_v25 }
 0x37c   :  { %v374_v30 = vsel %vm373_vm1, %v1450_v22, %v370_v26  ;;  %v1350_v22 = vld [vmem:[%s2254_s4 + $0x98] sm:$0xff] }
 0x37d   :  { %v379_v32 = vsel %vm376_vm2, %v378_v31, %v374_v30  ;;  %575 = vmatpush.msrb.mxu0 %v1350_v22  ;;  %v36_v31 = vld [vmem:[%s2252_s0 + $0x38] sm:$0xff] }
 0x37f   :  { %576 = vmatpush.msrb.mxu0 %v1349_v23 }
 0x381   :  { %577 = vmatpush.msrb.mxu0 %v1348_v24 }
 0x383   :  { %1317 = vmatmul.msk.f32.gmra.mxu0 %vm45_vm0, %v35_v29  ;;  %1325 = vmatmul.msk.f32.gmra.mxu1 %vm45_vm0, %v35_v29 }
 0x38b   :  { %1318 = vmatmul.msk.f32.gmra.mxu0 %vm45_vm0, %v36_v31  ;;  %1326 = vmatmul.msk.f32.gmra.mxu1 %vm45_vm0, %v36_v31 }
 0x3c4   :  { %v396_v33 = vpop.permute.xlu2 %395 }
 0x3c5   :  { %v398_v34 = vmul.f32 %v396_v33, %v379_v32 }
 0x3c7   :  { %1341 = vmatmul.msk.f32.vlgmr.msra.gmra.mxu2 %vm186_vm9, %v398_v34  ;;  %1344 = vmatmul.msk.f32.vlgmr.msrb.gmra.mxu3 %vm186_vm9, %v398_v34 }
 0x3c8   :  { %614 = vmatpush.msra.mxu2 %v1593_v0 }
 0x3ca   :  { %615 = vmatpush.msra.mxu2 %v1598_v1 }
 0x3cc   :  { %616 = vmatpush.msra.mxu2 %v1604_v2 }
 0x3ce   :  { %617 = vmatpush.msra.mxu2 %v1626_v7 }
 0x3cf   :  { %1343 = vmatmul.msk.f32.vlgmr.msrb.gmra.mxu2 %vm186_vm9, %v398_v34 }
 0x3d0   :  { %618 = vmatpush.msra.mxu2 %v1640_v9 }
 0x3d2   :  { %619 = vmatpush.msra.mxu2 %v1655_v12 }
 0x3d4   :  { %620 = vmatpush.msra.mxu2 %v1669_v14 }
 0x3d6   :  { %621 = vmatpush.msra.mxu2 %v1682_v16 }
 0x44a   :  { %v428_v38 = vpop.f32.mrf.mxu2  ;;  %v490_v39 = vpop.f32.mrf.mxu3 }
 0x44b   :  { %v1842_v40 = vadd.f32 %v448_v35, %v428_v38  ;;  %v1844_v41 = vadd.f32 %v490_v39, %v135_v37  ;;  %v1347_v35 = vld [vmem:[%s2254_s4 + $0x80] sm:$0xff] }
 0x44c   :  { %578 = vmatpush.msrb.mxu0 %v1347_v35  ;;  %v1364_v35 = vld [vmem:[%s2254_s4 + $0xe0] sm:$0xff] }
 0x44d   :  { %1451 = vtanh.f32 %v1844_v41 }
 0x44e   :  { %727 = vmatpush.msra.mxu0 %v1616_v5 }
 0x450   :  { %728 = vmatpush.msra.mxu0 %v1621_v6 }
 0x452   :  { %v470_v45 = vpop.f32.mrf.mxu2  ;;  %729 = vmatpush.msra.mxu0 %v1634_v8 }
 0x453   :  { %v1452_v42 = vpop.eup %1451  ;;  %v493_v46 = vadd.f32 %v470_v45, %v94_v44 }
 0x454   :  { %536 = vrot.lane.b32.xlu0 %v1452_v42, %s1544_s22  ;;  %730 = vmatpush.msra.mxu0 %v1650_v11 }
 0x455   :  { %v1345_v47 = vmul.f32 -1.442695, %v493_v46 }
 0x456   :  { %731 = vmatpush.msra.mxu0 %v1663_v13 }
 0x457   :  { %1453 = vpow2.f32 %v1345_v47 }
 0x458   :  { %732 = vmatpush.msra.mxu0 %v1676_v15 }
 0x45a   :  { %733 = vmatpush.msra.mxu0 %v1689_v17 }
 0x45c   :  { %734 = vmatpush.msra.mxu0 %v1697_v18 }
 0x45d   :  { %v1454_v48 = vpop.eup %1453 }
 0x45e   :  { %v501_v49 = vadd.f32 1.0, %v1454_v48 }
 0x460   :  { %1455 = vrcp.f32 %v501_v49  ;;  %v514_v56 = vand.u32 2147483648, %v501_v49  ;;  %vm508_vm4 = vweird.f32 %v501_v49  ;;  %v512_v57 = vand.u32 2147483647, %v501_v49 }
 0x462   :  { %v515_v59 = vor.u32 1.1754944e-38, %v514_v56  ;;  %vm513_vm6 = vcmp.eq.f32.partialorder %v512_v57, 8.507059e+37 }
 0x466   :  { %v1456_v50 = vpop.eup %1455 }
 0x467   :  { %v504_v51 = vmul.f32 %v1456_v50, %v501_v49  ;;  %vm509_vm3 = vweird.f32 %v1456_v50  ;;  %v137_v49 = vpop.f32.mrf.mxu1 }
 0x468   :  { %vm510_vm5 = vmor %vm508_vm4, %vm509_vm3 }
 0x469   :  { %v505_v53 = vsub.f32 1.0, %v504_v51 }
 0x46b   :  { %v506_v54 = vmul.f32 %v1456_v50, %v505_v53 }
 0x46d   :  { %v507_v55 = vadd.f32 %v1456_v50, %v506_v54 }
 0x46f   :  { %v511_v58 = vsel %vm510_vm5, %v1456_v50, %v507_v55  ;;  %v138_v50 = vadd.f32 %v137_v49, %v1732_v21  ;;  %v1926_v55 = vpop.f32.mrf.mxu1 }
 0x470   :  { %v516_v61 = vsel %vm513_vm6, %v515_v59, %v511_v58  ;;  %v96_v59 = vpop.f32.mrf.mxu0 }
 0x471   :  { %v534_v26 = vmul.f32 %v516_v61, %v1817_v3  ;;  %v1346_v3 = vmul.f32 -1.442695, %v1844_v41 }
 0x477   :  { %v1928_v56 = vpop.f32.mrf.mxu1 }
 0x47f   :  { %v1930_v57 = vpop.f32.mrf.mxu1 }
 0x487   :  { %v1932_v58 = vpop.f32.mrf.mxu1 }
 0x4c6   :  { %v537_v60 = vpop.permute.xlu0 %536 }
 0x4c7   :  { %v539_v62 = vmul.f32 %v537_v60, %v516_v61  ;;  %v97_v60 = vadd.f32 %v96_v59, %v1736_v27 }
 0x4c9   :  { %541 = vrot.lane.b32.xlu1 %v539_v62, %s1544_s22 }
 0x53b   :  { %v542_v28 = vpop.permute.xlu1 %541 }
 0x53c   :  { %v1890_v30 = vadd.f32 %v542_v28, %v534_v26 }
 0x53e   :  { %1457 = vtanh.f32 %v1890_v30 }
 0x53f   :  { %1459 = vpow2.f32 %v1346_v3  ;;  %v1367_v3 = vld [vmem:[%s2254_s4 + $0xf8] sm:$0xff] }
 0x540   :  { %704 = vmatpush.msra.mxu3 %v1367_v3  ;;  %v1376_v3 = vld [vmem:[%s2254_s4 + $0x118] sm:$0xff] }
 0x544   :  { %v1458_v32 = vpop.eup %1457 }
 0x545   :  { %547 = vrot.lane.b32.xlu2 %v1458_v32, %s1544_s22  ;;  %v1460_v33 = vpop.eup %1459 }
 0x546   :  { %v502_v34 = vadd.f32 1.0, %v1460_v33  ;;  %v1366_v33 = vld [vmem:[%s2254_s4 + $0xf0] sm:$0xff] }
 0x547   :  { %705 = vmatpush.msra.mxu3 %v1366_v33  ;;  %v1375_v33 = vld [vmem:[%s2254_s4 + $0x110] sm:$0xff] }
 0x548   :  { %1461 = vrcp.f32 %v502_v34  ;;  %v529_v42 = vand.u32 2147483648, %v502_v34  ;;  %vm523_vm7 = vweird.f32 %v502_v34  ;;  %v527_v43 = vand.u32 2147483647, %v502_v34 }
 0x54a   :  { %v530_v45 = vor.u32 1.1754944e-38, %v529_v42  ;;  %vm528_vm10 = vcmp.eq.f32.partialorder %v527_v43, 8.507059e+37 }
 0x54e   :  { %v1462_v36 = vpop.eup %1461 }
 0x54f   :  { %v519_v37 = vmul.f32 %v1462_v36, %v502_v34  ;;  %vm524_vm0 = vweird.f32 %v1462_v36  ;;  %v1365_v34 = vld [vmem:[%s2254_s4 + $0xe8] sm:$0xff] }
 0x550   :  { %vm525_vm8 = vmor %vm523_vm7, %vm524_vm0  ;;  %706 = vmatpush.msra.mxu3 %v1365_v34  ;;  %v1374_v34 = vld [vmem:[%s2254_s4 + $0x108] sm:$0xff] }
 0x551   :  { %v520_v38 = vsub.f32 1.0, %v519_v37  ;;  %v1362_v37 = vld [vmem:[%s2254_s4 + $0xd0] sm:$0xff] }
 0x552   :  { %707 = vmatpush.msra.mxu3 %v1364_v35 }
 0x553   :  { %v521_v39 = vmul.f32 %v1462_v36, %v520_v38  ;;  %v1361_v38 = vld [vmem:[%s2254_s4 + $0xc8] sm:$0xff] }
 0x555   :  { %v522_v41 = vadd.f32 %v1462_v36, %v521_v39 }
 0x557   :  { %v526_v44 = vsel %vm525_vm8, %v1462_v36, %v522_v41  ;;  %v1363_v36 = vld [vmem:[%s2254_s4 + $0xd8] sm:$0xff] }
 0x558   :  { %v531_v46 = vsel %vm528_vm10, %v530_v45, %v526_v44  ;;  %708 = vmatpush.msra.mxu3 %v1363_v36 }
 0x55a   :  { %709 = vmatpush.msra.mxu3 %v1362_v37 }
 0x55c   :  { %710 = vmatpush.msra.mxu3 %v1361_v38 }
 0x59f   :  { %v548_v47 = vpop.permute.xlu2 %547 }
 0x5a0   :  { %v550_v48 = vmul.f32 %v548_v47, %v531_v46  ;;  %v1360_v47 = vld [vmem:[%s2254_s4 + $0xc0] sm:$0xff] }
 0x5a1   :  { %711 = vmatpush.msra.mxu3 %v1360_v47  ;;  %v2047_v47 = vld [vmem:[%s2250_s3 + $0x40] sm:$0xff] }
 0x5a2   :  { %1355 = vmatmul.msk.f32.vlgmr.msrb.gmra.mxu0 %vm186_vm9, %v550_v48  ;;  %1356 = vmatmul.msk.f32.vlgmr.msrb.gmra.mxu1 %vm186_vm9, %v550_v48 }
 0x5a3   :  { %1357 = vmatmul.msk.f32.vlgmr.msra.gmra.mxu2 %vm186_vm9, %v550_v48  ;;  %880 = vmatpush.msrb.mxu0 %v1593_v0 }
 0x5a4   :  { %860 = vmatpush.msrb.mxu3 %v1616_v5 }
 0x5a5   :  { %881 = vmatpush.msrb.mxu0 %v1598_v1 }
 0x5a6   :  { %861 = vmatpush.msrb.mxu3 %v1621_v6 }
 0x5a7   :  { %882 = vmatpush.msrb.mxu0 %v1604_v2 }
 0x5a8   :  { %862 = vmatpush.msrb.mxu3 %v1634_v8 }
 0x5a9   :  { %883 = vmatpush.msrb.mxu0 %v1626_v7 }
 0x5aa   :  { %863 = vmatpush.msrb.mxu3 %v1650_v11 }
 0x5ab   :  { %884 = vmatpush.msrb.mxu0 %v1640_v9 }
 0x5ac   :  { %864 = vmatpush.msrb.mxu3 %v1663_v13 }
 0x5ad   :  { %885 = vmatpush.msrb.mxu0 %v1655_v12 }
 0x5ae   :  { %865 = vmatpush.msrb.mxu3 %v1676_v15  ;;  %v141_v15 = vadd.f32 %v1926_v55, %v1732_v21 }
 0x5af   :  { %886 = vmatpush.msrb.mxu0 %v1669_v14 }
 0x5b0   :  { %866 = vmatpush.msrb.mxu3 %v1689_v17 }
 0x5b1   :  { %887 = vmatpush.msrb.mxu0 %v1682_v16 }
 0x5b2   :  { %867 = vmatpush.msrb.mxu3 %v1697_v18 }
 0x61f   :  { %v603_v61 = vpop.f32.mrf.mxu1 }
 0x620   :  { %v626_v62 = vadd.f32 %v603_v61, %v97_v60 }
 0x622   :  { %v1358_v63 = vmul.f32 -1.442695, %v626_v62 }
 0x626   :  { %v623_v51 = vpop.f32.mrf.mxu2 }
 0x627   :  { %v627_v53 = vadd.f32 %v623_v51, %v138_v50 }
 0x629   :  { %1463 = vtanh.f32 %v627_v53  ;;  %v1359_v44 = vmul.f32 -1.442695, %v627_v53 }
 0x62a   :  { %1465 = vpow2.f32 %v1358_v63 }
 0x62f   :  { %v1464_v54 = vpop.eup %1463 }
 0x630   :  { %669 = vrot.lane.b32.xlu0 %v1464_v54, %s1544_s22  ;;  %v1466_v4 = vpop.eup %1465 }
 0x631   :  { %v634_v10 = vadd.f32 1.0, %v1466_v4 }
 0x633   :  { %1467 = vrcp.f32 %v634_v10  ;;  %v647_v24 = vand.u32 2147483648, %v634_v10  ;;  %vm641_vm12 = vweird.f32 %v634_v10  ;;  %v645_v25 = vand.u32 2147483647, %v634_v10 }
 0x635   :  { %v648_v28 = vor.u32 1.1754944e-38, %v647_v24  ;;  %vm646_vm14 = vcmp.eq.f32.partialorder %v645_v25, 8.507059e+37 }
 0x639   :  { %v1468_v52 = vpop.eup %1467 }
 0x63a   :  { %v637_v19 = vmul.f32 %v1468_v52, %v634_v10  ;;  %vm642_vm11 = vweird.f32 %v1468_v52 }
 0x63b   :  { %vm643_vm13 = vmor %vm641_vm12, %vm642_vm11 }
 0x63c   :  { %v638_v20 = vsub.f32 1.0, %v637_v19 }
 0x63e   :  { %v639_v22 = vmul.f32 %v1468_v52, %v638_v20 }
 0x640   :  { %v640_v23 = vadd.f32 %v1468_v52, %v639_v22 }
 0x642   :  { %v644_v26 = vsel %vm643_vm13, %v1468_v52, %v640_v23 }
 0x643   :  { %v649_v31 = vsel %vm646_vm14, %v648_v28, %v644_v26  ;;  %v1380_v28 = vld [vmem:[%s2254_s4 + $0x138] sm:$0xff] }
 0x644   :  { %v667_v39 = vmul.f32 %v649_v31, %v1890_v30  ;;  %837 = vmatpush.msrb.mxu2 %v1380_v28 }
 0x6a2   :  { %v670_v29 = vpop.permute.xlu0 %669 }
 0x6a3   :  { %v672_v32 = vmul.f32 %v670_v29, %v649_v31  ;;  %v1379_v29 = vld [vmem:[%s2254_s4 + $0x130] sm:$0xff]  ;;  %v1378_v31 = vld [vmem:[%s2254_s4 + $0x128] sm:$0xff] }
 0x6a4   :  { %838 = vmatpush.msrb.mxu2 %v1379_v29 }
 0x6a5   :  { %674 = vrot.lane.b32.xlu1 %v672_v32, %s1544_s22  ;;  %v1377_v32 = vld [vmem:[%s2254_s4 + $0x120] sm:$0xff] }
 0x6a6   :  { %839 = vmatpush.msrb.mxu2 %v1378_v31 }
 0x6a8   :  { %840 = vmatpush.msrb.mxu2 %v1377_v32 }
 0x6aa   :  { %841 = vmatpush.msrb.mxu2 %v1376_v3 }
 0x6ac   :  { %842 = vmatpush.msrb.mxu2 %v1375_v33 }
 0x6ae   :  { %843 = vmatpush.msrb.mxu2 %v1374_v34 }
 0x717   :  { %v675_v41 = vpop.permute.xlu1 %674 }
 0x718   :  { %v1958_v42 = vadd.f32 %v675_v41, %v667_v39 }
 0x71a   :  { %1469 = vtanh.f32 %v1958_v42 }
 0x71b   :  { %1471 = vpow2.f32 %v1359_v44  ;;  %v1373_v44 = vld [vmem:[%s2254_s4 + $0x100] sm:$0xff] }
 0x71c   :  { %844 = vmatpush.msrb.mxu2 %v1373_v44  ;;  %v1390_v44 = vld [vmem:[%s2254_s4 + $0x160] sm:$0xff] }
 0x720   :  { %v1470_v43 = vpop.eup %1469 }
 0x721   :  { %680 = vrot.lane.b32.xlu2 %v1470_v43, %s1544_s22  ;;  %v1472_v45 = vpop.eup %1471 }
 0x722   :  { %v635_v46 = vadd.f32 1.0, %v1472_v45  ;;  %v2035_v45 = vld [vmem:[%s2250_s3 + $0x60] sm:$0xff] }
 0x724   :  { %1473 = vrcp.f32 %v635_v46  ;;  %v662_v51 = vand.u32 2147483648, %v635_v46  ;;  %vm656_vm1 = vweird.f32 %v635_v46  ;;  %v660_v6 = vand.u32 2147483647, %v635_v46 }
 0x726   :  { %v663_v11 = vor.u32 1.1754944e-38, %v662_v51  ;;  %vm661_vm3 = vcmp.eq.f32.partialorder %v660_v6, 8.507059e+37  ;;  %v2071_v6 = vld [vmem:[%s2250_s3] sm:$0xff] }
 0x72a   :  { %v1474_v30 = vpop.eup %1473 }
 0x72b   :  { %v652_v48 = vmul.f32 %v1474_v30, %v635_v46  ;;  %vm657_vm15 = vweird.f32 %v1474_v30  ;;  %v2041_v46 = vld [vmem:[%s2250_s3 + $0x50] sm:$0xff] }
 0x72c   :  { %vm658_vm2 = vmor %vm656_vm1, %vm657_vm15 }
 0x72d   :  { %v653_v49 = vsub.f32 1.0, %v652_v48  ;;  %v2053_v48 = vld [vmem:[%s2250_s3 + $0x30] sm:$0xff] }
 0x72f   :  { %v654_v50 = vmul.f32 %v1474_v30, %v653_v49 }
 0x731   :  { %v655_v5 = vadd.f32 %v1474_v30, %v654_v50  ;;  %v2059_v50 = vld [vmem:[%s2250_s3 + $0x20] sm:$0xff] }
 0x733   :  { %v659_v8 = vsel %vm658_vm2, %v1474_v30, %v655_v5  ;;  %v2065_v5 = vld [vmem:[%s2250_s3 + $0x10] sm:$0xff] }
 0x734   :  { %v664_v53 = vsel %vm661_vm3, %v663_v11, %v659_v8 }
 0x77b   :  { %v681_v13 = vpop.permute.xlu2 %680 }
 0x77c   :  { %v683_v54 = vmul.f32 %v681_v13, %v664_v53 }
 0x77e   :  { %1368 = vmatmul.msk.f32.vlgmr.msra.gmra.mxu3 %vm186_vm9, %v683_v54  ;;  %1369 = vmatmul.msk.f32.vlgmr.msra.gmra.mxu0 %vm186_vm9, %v683_v54 }
 0x77f   :  { %1370 = vmatmul.msk.f32.vlgmr.msra.gmra.mxu1 %vm186_vm9, %v683_v54  ;;  %1013 = vmatpush.msra.mxu3 %v1593_v0 }
 0x781   :  { %1014 = vmatpush.msra.mxu3 %v1598_v1  ;;  %v99_v1 = vpop.f32.mrf.mxu0 }
 0x783   :  { %1015 = vmatpush.msra.mxu3 %v1604_v2 }
 0x785   :  { %1016 = vmatpush.msra.mxu3 %v1626_v7 }
 0x787   :  { %1017 = vmatpush.msra.mxu3 %v1640_v9 }
 0x789   :  { %1018 = vmatpush.msra.mxu3 %v1655_v12  ;;  %v1987_v2 = vpop.f32.mrf.mxu0 }
 0x78b   :  { %1019 = vmatpush.msra.mxu3 %v1669_v14  ;;  %v100_v14 = vadd.f32 %v99_v1, %v1736_v27  ;;  %v1535_v1 = vld [vmem:[%s2250_s3 + $0x78] sm:$0xff] }
 0x78d   :  { %1020 = vmatpush.msra.mxu3 %v1682_v16 }
 0x791   :  { %v1989_v7 = vpop.f32.mrf.mxu0 }
 0x799   :  { %v1991_v9 = vpop.f32.mrf.mxu0 }
 0x7a1   :  { %v1993_v12 = vpop.f32.mrf.mxu0 }
 0x7fb   :  { %v736_v16 = vpop.f32.mrf.mxu0 }
 0x7fc   :  { %v756_v17 = vpop.f32.mrf.mxu1  ;;  %v759_v59 = vadd.f32 %v736_v16, %v100_v14  ;;  %v1536_v14 = vld [vmem:[%s2250_s3 + $0x68] sm:$0xff]  ;;  %v1537_v16 = vld [vmem:[%s2250_s3 + $0x58] sm:$0xff] }
 0x7fd   :  { %v760_v18 = vadd.f32 %v756_v17, %v141_v15 }
 0x7fe   :  { %v1371_v55 = vmul.f32 -1.442695, %v759_v59  ;;  %v1538_v59 = vld [vmem:[%s2250_s3 + $0x48] sm:$0xff] }
 0x7ff   :  { %1475 = vtanh.f32 %v760_v18  ;;  %v1372_v39 = vmul.f32 -1.442695, %v760_v18 }
 0x800   :  { %1477 = vpow2.f32 %v1371_v55  ;;  %v1539_v55 = vld [vmem:[%s2250_s3 + $0x38] sm:$0xff] }
 0x805   :  { %v1476_v0 = vpop.eup %1475 }
 0x806   :  { %802 = vrot.lane.b32.xlu0 %v1476_v0, %s1544_s22  ;;  %v1478_v60 = vpop.eup %1477 }
 0x807   :  { %v767_v61 = vadd.f32 1.0, %v1478_v60  ;;  %v1540_v60 = vld [vmem:[%s2250_s3 + $0x28] sm:$0xff] }
 0x809   :  { %1479 = vrcp.f32 %v767_v61  ;;  %v780_v19 = vand.u32 2147483648, %v767_v61  ;;  %vm774_vm5 = vweird.f32 %v767_v61  ;;  %v778_v20 = vand.u32 2147483647, %v767_v61 }
 0x80b   :  { %v781_v23 = vor.u32 1.1754944e-38, %v780_v19  ;;  %vm779_vm0 = vcmp.eq.f32.partialorder %v778_v20, 8.507059e+37  ;;  %v2104_v19 = vpop.f32.mrf.mxu3 }
 0x80f   :  { %v1480_v62 = vpop.eup %1479 }
 0x810   :  { %v770_v63 = vmul.f32 %v1480_v62, %v767_v61  ;;  %vm775_vm4 = vweird.f32 %v1480_v62  ;;  %v1541_v61 = vld [vmem:[%s2250_s3 + $0x18] sm:$0xff] }
 0x811   :  { %vm776_vm6 = vmor %vm774_vm5, %vm775_vm4 }
 0x812   :  { %v771_v4 = vsub.f32 1.0, %v770_v63  ;;  %v144_v63 = vadd.f32 %v1928_v56, %v1732_v21 }
 0x814   :  { %v772_v10 = vmul.f32 %v1480_v62, %v771_v4 }
 0x816   :  { %v773_v52 = vadd.f32 %v1480_v62, %v772_v10 }
 0x818   :  { %v777_v22 = vsel %vm776_vm6, %v1480_v62, %v773_v52  ;;  %v1542_v62 = vld [vmem:[%s2250_s3 + $0x8] sm:$0xff] }
 0x819   :  { %v782_v25 = vsel %vm779_vm0, %v781_v23, %v777_v22  ;;  %v103_v22 = vadd.f32 %v1987_v2, %v1736_v27 }
 0x81a   :  { %v800_v35 = vmul.f32 %v782_v25, %v1958_v42  ;;  %v2029_v42 = vld [vmem:[%s2250_s3 + $0x70] sm:$0xff] }
 0x81b   :  { %993 = vmatpush.msra.mxu2 %v2029_v42 }
 0x81d   :  { %994 = vmatpush.msra.mxu2 %v2035_v45 }
 0x81f   :  { %995 = vmatpush.msra.mxu2 %v2041_v46 }
 0x821   :  { %996 = vmatpush.msra.mxu2 %v2047_v47 }
 0x823   :  { %997 = vmatpush.msra.mxu2 %v2053_v48 }
 0x825   :  { %998 = vmatpush.msra.mxu2 %v2059_v50 }
 0x827   :  { %999 = vmatpush.msra.mxu2 %v2065_v5 }
 0x829   :  { %1000 = vmatpush.msra.mxu2 %v2071_v6 }
 0x878   :  { %v803_v24 = vpop.permute.xlu0 %802 }
 0x879   :  { %v805_v26 = vmul.f32 %v803_v24, %v782_v25 }
 0x87b   :  { %807 = vrot.lane.b32.xlu1 %v805_v26, %s1544_s22 }
 0x8ed   :  { %v808_v36 = vpop.permute.xlu1 %807 }
 0x8ee   :  { %v2019_v37 = vadd.f32 %v808_v36, %v800_v35 }
 0x8f0   :  { %1481 = vtanh.f32 %v2019_v37 }
 0x8f1   :  { %1483 = vpow2.f32 %v1372_v39  ;;  %v1393_v39 = vld [vmem:[%s2254_s4 + $0x178] sm:$0xff] }
 0x8f2   :  { %970 = vmatpush.msrb.mxu1 %v1393_v39 }
 0x8f6   :  { %v1482_v38 = vpop.eup %1481 }
 0x8f7   :  { %813 = vrot.lane.b32.xlu2 %v1482_v38, %s1544_s22  ;;  %v1484_v41 = vpop.eup %1483 }
 0x8f8   :  { %v768_v43 = vadd.f32 1.0, %v1484_v41  ;;  %v1392_v41 = vld [vmem:[%s2254_s4 + $0x170] sm:$0xff] }
 0x8f9   :  { %971 = vmatpush.msrb.mxu1 %v1392_v41 }
 0x8fa   :  { %1485 = vrcp.f32 %v768_v43  ;;  %v795_v53 = vand.u32 2147483648, %v768_v43  ;;  %vm789_vm8 = vweird.f32 %v768_v43  ;;  %v793_v13 = vand.u32 2147483647, %v768_v43 }
 0x8fc   :  { %v796_v15 = vor.u32 1.1754944e-38, %v795_v53  ;;  %vm794_vm11 = vcmp.eq.f32.partialorder %v793_v13, 8.507059e+37 }
 0x900   :  { %v1486_v30 = vpop.eup %1485 }
 0x901   :  { %v785_v49 = vmul.f32 %v1486_v30, %v768_v43  ;;  %vm790_vm7 = vweird.f32 %v1486_v30  ;;  %v1391_v43 = vld [vmem:[%s2254_s4 + $0x168] sm:$0xff] }
 0x902   :  { %vm791_vm10 = vmor %vm789_vm8, %vm790_vm7  ;;  %972 = vmatpush.msrb.mxu1 %v1391_v43 }
 0x903   :  { %v786_v51 = vsub.f32 1.0, %v785_v49  ;;  %v1388_v49 = vld [vmem:[%s2254_s4 + $0x150] sm:$0xff] }
 0x904   :  { %973 = vmatpush.msrb.mxu1 %v1390_v44 }
 0x905   :  { %v787_v8 = vmul.f32 %v1486_v30, %v786_v51  ;;  %v1387_v51 = vld [vmem:[%s2254_s4 + $0x148] sm:$0xff] }
 0x907   :  { %v788_v11 = vadd.f32 %v1486_v30, %v787_v8 }
 0x909   :  { %v792_v54 = vsel %vm791_vm10, %v1486_v30, %v788_v11  ;;  %v1389_v30 = vld [vmem:[%s2254_s4 + $0x158] sm:$0xff] }
 0x90a   :  { %v797_v17 = vsel %vm794_vm11, %v796_v15, %v792_v54  ;;  %974 = vmatpush.msrb.mxu1 %v1389_v30 }
 0x90c   :  { %975 = vmatpush.msrb.mxu1 %v1388_v49 }
 0x90e   :  { %976 = vmatpush.msrb.mxu1 %v1387_v51 }
 0x951   :  { %v814_v18 = vpop.permute.xlu2 %813 }
 0x952   :  { %v816_v0 = vmul.f32 %v814_v18, %v797_v17  ;;  %v1386_v18 = vld [vmem:[%s2254_s4 + $0x140] sm:$0xff] }
 0x953   :  { %977 = vmatpush.msrb.mxu1 %v1386_v18 }
 0x954   :  { %1381 = vmatmul.msk.f32.vlgmr.msrb.gmra.mxu2 %vm186_vm9, %v816_v0  ;;  %1382 = vmatmul.msk.f32.vlgmr.msrb.gmra.mxu3 %vm186_vm9, %v816_v0 }
 0x955   :  { %1383 = vmatmul.msk.f32.vlgmr.msrb.gmra.mxu0 %vm186_vm9, %v816_v0  ;;  %1146 = vmatpush.msrb.mxu2 %v1535_v1 }
 0x956   :  { %1126 = vmatpush.msra.mxu1 %v2029_v42 }
 0x957   :  { %1147 = vmatpush.msrb.mxu2 %v1536_v14 }
 0x958   :  { %1127 = vmatpush.msra.mxu1 %v2035_v45 }
 0x959   :  { %1148 = vmatpush.msrb.mxu2 %v1537_v16 }
 0x95a   :  { %1128 = vmatpush.msra.mxu1 %v2041_v46 }
 0x95b   :  { %1149 = vmatpush.msrb.mxu2 %v1538_v59 }
 0x95c   :  { %1129 = vmatpush.msra.mxu1 %v2047_v47 }
 0x95d   :  { %1150 = vmatpush.msrb.mxu2 %v1539_v55 }
 0x95e   :  { %1130 = vmatpush.msra.mxu1 %v2053_v48 }
 0x95f   :  { %1151 = vmatpush.msrb.mxu2 %v1540_v60 }
 0x960   :  { %1131 = vmatpush.msra.mxu1 %v2059_v50  ;;  %v147_v50 = vadd.f32 %v1930_v57, %v1732_v21 }
 0x961   :  { %1152 = vmatpush.msrb.mxu2 %v1541_v61 }
 0x962   :  { %1132 = vmatpush.msra.mxu1 %v2065_v5 }
 0x963   :  { %1153 = vmatpush.msrb.mxu2 %v1542_v62 }
 0x964   :  { %1133 = vmatpush.msra.mxu1 %v2071_v6 }
 0x9d2   :  { %v889_v4 = vpop.f32.mrf.mxu0 }
 0x9d3   :  { %v893_v10 = vadd.f32 %v889_v4, %v144_v63  ;;  %v106_v63 = vadd.f32 %v1989_v7, %v1736_v27 }
 0x9d5   :  { %1487 = vtanh.f32 %v893_v10  ;;  %v1385_v54 = vmul.f32 -1.442695, %v893_v10 }
 0x9d7   :  { %v869_v20 = vpop.f32.mrf.mxu3  ;;  %v2152_v61 = vpop.f32.mrf.mxu2 }
 0x9d8   :  { %v892_v23 = vadd.f32 %v869_v20, %v103_v22 }
 0x9da   :  { %v1384_v24 = vmul.f32 -1.442695, %v892_v23 }
 0x9db   :  { %v1488_v52 = vpop.eup %1487 }
 0x9dc   :  { %935 = vrot.lane.b32.xlu0 %v1488_v52, %s1544_s22  ;;  %1489 = vpow2.f32 %v1384_v24 }
 0x9e2   :  { %v1490_v25 = vpop.eup %1489 }
 0x9e3   :  { %v900_v26 = vadd.f32 1.0, %v1490_v25 }
 0x9e5   :  { %1491 = vrcp.f32 %v900_v26  ;;  %v913_v3 = vand.u32 2147483648, %v900_v26  ;;  %vm907_vm13 = vweird.f32 %v900_v26  ;;  %v911_v33 = vand.u32 2147483647, %v900_v26 }
 0x9e7   :  { %v914_v35 = vor.u32 1.1754944e-38, %v913_v3  ;;  %vm912_vm15 = vcmp.eq.f32.partialorder %v911_v33, 8.507059e+37  ;;  %v1406_v3 = vld [vmem:[%s2254_s4 + $0x1b8] sm:$0xff]  ;;  %v1405_v33 = vld [vmem:[%s2254_s4 + $0x1b0] sm:$0xff] }
 0x9e8   :  { %1103 = vmatpush.msra.mxu0 %v1406_v3 }
 0x9ea   :  { %1104 = vmatpush.msra.mxu0 %v1405_v33 }
 0x9eb   :  { %v1492_v28 = vpop.eup %1491 }
 0x9ec   :  { %v903_v56 = vmul.f32 %v1492_v28, %v900_v26  ;;  %vm908_vm12 = vweird.f32 %v1492_v28 }
 0x9ed   :  { %vm909_vm14 = vmor %vm907_vm13, %vm908_vm12 }
 0x9ee   :  { %v904_v29 = vsub.f32 1.0, %v903_v56 }
 0x9f0   :  { %v905_v31 = vmul.f32 %v1492_v28, %v904_v29 }
 0x9f2   :  { %v906_v32 = vadd.f32 %v1492_v28, %v905_v31 }
 0x9f4   :  { %v910_v34 = vsel %vm909_vm14, %v1492_v28, %v906_v32 }
 0x9f5   :  { %v915_v36 = vsel %vm912_vm15, %v914_v35, %v910_v34  ;;  %v1404_v34 = vld [vmem:[%s2254_s4 + $0x1a8] sm:$0xff]  ;;  %v1403_v35 = vld [vmem:[%s2254_s4 + $0x1a0] sm:$0xff] }
 0x9f6   :  { %v933_v8 = vmul.f32 %v915_v36, %v2019_v37  ;;  %1105 = vmatpush.msra.mxu0 %v1404_v34 }
 0x9f8   :  { %1106 = vmatpush.msra.mxu0 %v1403_v35 }
 0xa4e   :  { %v936_v2 = vpop.permute.xlu0 %935 }
 0xa4f   :  { %v938_v38 = vmul.f32 %v936_v2, %v915_v36  ;;  %v1402_v2 = vld [vmem:[%s2254_s4 + $0x198] sm:$0xff]  ;;  %v1401_v36 = vld [vmem:[%s2254_s4 + $0x190] sm:$0xff] }
 0xa50   :  { %1107 = vmatpush.msra.mxu0 %v1402_v2  ;;  %v1412_v2 = vld [vmem:[%s2254_s4 + $0x1c0] sm:$0xff] }
 0xa51   :  { %940 = vrot.lane.b32.xlu1 %v938_v38, %s1544_s22  ;;  %v1400_v38 = vld [vmem:[%s2254_s4 + $0x188] sm:$0xff] }
 0xa52   :  { %1108 = vmatpush.msra.mxu0 %v1401_v36  ;;  %v1257_v36 = vld [vmem:[%s2256_s6 + $0x18] sm:$0xff] }
 0xa54   :  { %1109 = vmatpush.msra.mxu0 %v1400_v38  ;;  %v1256_v38 = vld [vmem:[%s2256_s6 + $0x10] sm:$0xff] }
 0xac3   :  { %v941_v11 = vpop.permute.xlu1 %940 }
 0xac4   :  { %v2131_v53 = vadd.f32 %v941_v11, %v933_v8  ;;  %v1399_v8 = vld [vmem:[%s2254_s4 + $0x180] sm:$0xff] }
 0xac5   :  { %1110 = vmatpush.msra.mxu0 %v1399_v8 }
 0xac6   :  { %1493 = vtanh.f32 %v2131_v53 }
 0xac7   :  { %1495 = vpow2.f32 %v1385_v54  ;;  %1278 = vmatpush.msrb.mxu0 %v1257_v36 }
 0xac9   :  { %1279 = vmatpush.msrb.mxu0 %v1256_v38 }
 0xacc   :  { %v1494_v13 = vpop.eup %1493 }
 0xacd   :  { %946 = vrot.lane.b32.xlu2 %v1494_v13, %s1544_s22  ;;  %v1496_v15 = vpop.eup %1495 }
 0xace   :  { %v901_v17 = vadd.f32 1.0, %v1496_v15 }
 0xad0   :  { %1497 = vrcp.f32 %v901_v17  ;;  %v928_v16 = vand.u32 2147483648, %v901_v17  ;;  %vm922_vm2 = vweird.f32 %v901_v17  ;;  %v926_v45 = vand.u32 2147483647, %v901_v17 }
 0xad2   :  { %v929_v47 = vor.u32 1.1754944e-38, %v928_v16  ;;  %vm927_vm4 = vcmp.eq.f32.partialorder %v926_v45, 8.507059e+37  ;;  %v150_v16 = vadd.f32 %v1932_v58, %v1732_v21 }
 0xad6   :  { %v1498_v37 = vpop.eup %1497 }
 0xad7   :  { %v918_v0 = vmul.f32 %v1498_v37, %v901_v17  ;;  %vm923_vm1 = vweird.f32 %v1498_v37 }
 0xad8   :  { %vm924_vm3 = vmor %vm922_vm2, %vm923_vm1 }
 0xad9   :  { %v919_v1 = vsub.f32 1.0, %v918_v0 }
 0xadb   :  { %v920_v14 = vmul.f32 %v1498_v37, %v919_v1 }
 0xadd   :  { %v921_v42 = vadd.f32 %v1498_v37, %v920_v14 }
 0xadf   :  { %v925_v46 = vsel %vm924_vm3, %v1498_v37, %v921_v42 }
 0xae0   :  { %v930_v59 = vsel %vm927_vm4, %v929_v47, %v925_v46 }
 0xb27   :  { %v947_v48 = vpop.permute.xlu2 %946 }
 0xb28   :  { %v949_v55 = vmul.f32 %v947_v48, %v930_v59 }
 0xb2a   :  { %1394 = vmatmul.msk.f32.vlgmr.msrb.gmra.mxu1 %vm186_vm9, %v949_v55  ;;  %1395 = vmatmul.msk.f32.vlgmr.msra.gmra.mxu2 %vm186_vm9, %v949_v55 }
 0xb2b   :  { %1396 = vmatmul.msk.f32.vlgmr.msra.gmra.mxu3 %vm186_vm9, %v949_v55  ;;  %v109_v55 = vadd.f32 %v1991_v9, %v1736_v27 }
 0xba7   :  { %v2192_v59 = vpop.f32.mrf.mxu1 }
 0xbad   :  { %v1002_v62 = vpop.f32.mrf.mxu2 }
 0xbae   :  { %v1022_v5 = vpop.f32.mrf.mxu3  ;;  %v1025_v4 = vadd.f32 %v1002_v62, %v106_v63 }
 0xbaf   :  { %v1026_v6 = vadd.f32 %v1022_v5, %v147_v50 }
 0xbb0   :  { %v1397_v10 = vmul.f32 -1.442695, %v1025_v4 }
 0xbb1   :  { %1499 = vtanh.f32 %v1026_v6  ;;  %v1398_v30 = vmul.f32 -1.442695, %v1026_v6 }
 0xbb2   :  { %1501 = vpow2.f32 %v1397_v10 }
 0xbb7   :  { %v1500_v60 = vpop.eup %1499 }
 0xbb8   :  { %1068 = vrot.lane.b32.xlu0 %v1500_v60, %s1544_s22  ;;  %v1502_v52 = vpop.eup %1501 }
 0xbb9   :  { %v1033_v20 = vadd.f32 1.0, %v1502_v52 }
 0xbbb   :  { %1503 = vrcp.f32 %v1033_v20  ;;  %v1046_v26 = vand.u32 2147483648, %v1033_v20  ;;  %vm1040_vm6 = vweird.f32 %v1033_v20  ;;  %v1044_v28 = vand.u32 2147483647, %v1033_v20 }
 0xbbd   :  { %v1047_v29 = vor.u32 1.1754944e-38, %v1046_v26  ;;  %vm1045_vm7 = vcmp.eq.f32.partialorder %v1044_v28, 8.507059e+37  ;;  %v1416_v26 = vld [vmem:[%s2254_s4 + $0x1e0] sm:$0xff]  ;;  %v1415_v28 = vld [vmem:[%s2254_s4 + $0x1d8] sm:$0xff] }
 0xbc1   :  { %v1504_v22 = vpop.eup %1503 }
 0xbc2   :  { %v1036_v57 = vmul.f32 %v1504_v22, %v1033_v20  ;;  %vm1041_vm5 = vweird.f32 %v1504_v22 }
 0xbc3   :  { %vm1042_vm0 = vmor %vm1040_vm6, %vm1041_vm5 }
 0xbc4   :  { %v1037_v23 = vsub.f32 1.0, %v1036_v57 }
 0xbc6   :  { %v1038_v24 = vmul.f32 %v1504_v22, %v1037_v23  ;;  %v1419_v23 = vld [vmem:[%s2254_s4 + $0x1f8] sm:$0xff] }
 0xbc7   :  { %1236 = vmatpush.msrb.mxu3 %v1419_v23 }
 0xbc8   :  { %v1039_v25 = vadd.f32 %v1504_v22, %v1038_v24  ;;  %v1418_v24 = vld [vmem:[%s2254_s4 + $0x1f0] sm:$0xff] }
 0xbc9   :  { %1237 = vmatpush.msrb.mxu3 %v1418_v24 }
 0xbca   :  { %v1043_v56 = vsel %vm1042_vm0, %v1504_v22, %v1039_v25  ;;  %v1417_v25 = vld [vmem:[%s2254_s4 + $0x1e8] sm:$0xff] }
 0xbcb   :  { %v1048_v31 = vsel %vm1045_vm7, %v1047_v29, %v1043_v56  ;;  %1238 = vmatpush.msrb.mxu3 %v1417_v25  ;;  %v1414_v56 = vld [vmem:[%s2254_s4 + $0x1d0] sm:$0xff]  ;;  %v1413_v29 = vld [vmem:[%s2254_s4 + $0x1c8] sm:$0xff] }
 0xbcc   :  { %v1066_v39 = vmul.f32 %v1048_v31, %v2131_v53 }
 0xbcd   :  { %1239 = vmatpush.msrb.mxu3 %v1416_v26 }
 0xbcf   :  { %1240 = vmatpush.msrb.mxu3 %v1415_v28 }
 0xbd1   :  { %1241 = vmatpush.msrb.mxu3 %v1414_v56 }
 0xbd3   :  { %1242 = vmatpush.msrb.mxu3 %v1413_v29 }
 0xbd5   :  { %1243 = vmatpush.msrb.mxu3 %v1412_v2 }
 0xc2a   :  { %v1069_v7 = vpop.permute.xlu0 %1068 }
 0xc2b   :  { %v1071_v32 = vmul.f32 %v1069_v7, %v1048_v31 }
 0xc2d   :  { %1073 = vrot.lane.b32.xlu1 %v1071_v32, %s1544_s22 }
 0xc9f   :  { %v1074_v41 = vpop.permute.xlu1 %1073 }
 0xca0   :  { %v2179_v43 = vadd.f32 %v1074_v41, %v1066_v39 }
 0xca2   :  { %1505 = vtanh.f32 %v2179_v43 }
 0xca3   :  { %1507 = vpow2.f32 %v1398_v30 }
 0xca8   :  { %v1506_v44 = vpop.eup %1505 }
 0xca9   :  { %1079 = vrot.lane.b32.xlu2 %v1506_v44, %s1544_s22  ;;  %v1508_v49 = vpop.eup %1507 }
 0xcaa   :  { %v1034_v51 = vadd.f32 1.0, %v1508_v49 }
 0xcac   :  { %1509 = vrcp.f32 %v1034_v51  ;;  %v1061_v17 = vand.u32 2147483648, %v1034_v51  ;;  %vm1055_vm10 = vweird.f32 %v1034_v51  ;;  %v1059_v18 = vand.u32 2147483647, %v1034_v51 }
 0xcae   :  { %v1062_v0 = vor.u32 1.1754944e-38, %v1061_v17  ;;  %vm1060_vm12 = vcmp.eq.f32.partialorder %v1059_v18, 8.507059e+37  ;;  %v1254_v17 = vld [vmem:[%s2256_s6] sm:$0xff]  ;;  %v583_v18 = vadd.f32 %v1993_v12, %v1842_v40 }
 0xcaf   :  { %v1426_v40 = vld [vmem:[%s2257_s7] ss:$0 sm:$0xff] }
 0xcb2   :  { %v1510_v11 = vpop.eup %1509 }
 0xcb3   :  { %v1051_v53 = vmul.f32 %v1510_v11, %v1034_v51  ;;  %vm1056_vm8 = vweird.f32 %v1510_v11 }
 0xcb4   :  { %vm1057_vm11 = vmor %vm1055_vm10, %vm1056_vm8  ;;  %vm1305_vm8 = vcmask 31744  }
 0xcb5   :  { %v1052_v13 = vsub.f32 1.0, %v1051_v53 }
 0xcb7   :  { %v1053_v54 = vmul.f32 %v1510_v11, %v1052_v13 }
 0xcb9   :  { %v1054_v15 = vadd.f32 %v1510_v11, %v1053_v54 }
 0xcbb   :  { %v1058_v37 = vsel %vm1057_vm11, %v1510_v11, %v1054_v15  ;;  %v1255_v15 = vld [vmem:[%s2256_s6 + $0x8] sm:$0xff] }
 0xcbc   :  { %v1063_v1 = vsel %vm1060_vm12, %v1062_v0, %v1058_v37  ;;  %1280 = vmatpush.msrb.mxu0 %v1255_v15  ;;  %v716_v37 = vadd.f32 %v2104_v19, %v583_v18 }
 0xcbe   :  { %1281 = vmatpush.msrb.mxu0 %v1254_v17  ;;  %v849_v0 = vadd.f32 %v2152_v61, %v716_v37 }
 0xd03   :  { %v1080_v14 = vpop.permute.xlu2 %1079 }
 0xd04   :  { %v1082_v42 = vmul.f32 %v1080_v14, %v1063_v1  ;;  %v982_v14 = vadd.f32 %v2192_v59, %v849_v0 }
 0xd06   :  { %1407 = vmatmul.msk.f32.vlgmr.msra.gmra.mxu0 %vm186_vm9, %v1082_v42  ;;  %1408 = vmatmul.msk.f32.vlgmr.msra.gmra.mxu1 %vm186_vm9, %v1082_v42 }
 0xd07   :  { %1409 = vmatmul.msk.f32.vlgmr.msrb.gmra.mxu2 %vm186_vm9, %v1082_v42 }
 0xd83   :  { %v1135_v48 = vpop.f32.mrf.mxu1  ;;  %v1112_v1 = vpop.f32.mrf.mxu0 }
 0xd84   :  { %v1158_v50 = vadd.f32 %v1135_v48, %v109_v55  ;;  %v1115_v42 = vadd.f32 %v1112_v1, %v982_v14 }
 0xd86   :  { %v1410_v5 = vmul.f32 -1.442695, %v1158_v50 }
 0xd8a   :  { %v1155_v45 = vpop.f32.mrf.mxu2 }
 0xd8b   :  { %v1159_v46 = vadd.f32 %v1155_v45, %v150_v16  ;;  %v1425_v16 = vld [vmem:[%s2255_s5] ss:$0 sm:$0xff] }
 0xd8d   :  { %1511 = vtanh.f32 %v1159_v46  ;;  %v1411_v33 = vmul.f32 -1.442695, %v1159_v46 }
 0xd8e   :  { %1513 = vpow2.f32 %v1410_v5 }
 0xd93   :  { %v1512_v47 = vpop.eup %1511 }
 0xd94   :  { %1201 = vrot.lane.b32.xlu0 %v1512_v47, %s1544_s22  ;;  %v1514_v6 = vpop.eup %1513 }
 0xd95   :  { %v1166_v60 = vadd.f32 1.0, %v1514_v6 }
 0xd97   :  { %1515 = vrcp.f32 %v1166_v60  ;;  %v1179_v10 = vand.u32 2147483648, %v1166_v60  ;;  %vm1173_vm14 = vweird.f32 %v1166_v60  ;;  %v1177_v52 = vand.u32 2147483647, %v1166_v60 }
 0xd99   :  { %v1180_v22 = vor.u32 1.1754944e-38, %v1179_v10  ;;  %vm1178_vm1 = vcmp.eq.f32.partialorder %v1177_v52, 8.507059e+37 }
 0xd9d   :  { %v1516_v62 = vpop.eup %1515 }
 0xd9e   :  { %v1169_v21 = vmul.f32 %v1516_v62, %v1166_v60  ;;  %vm1174_vm13 = vweird.f32 %v1516_v62 }
 0xd9f   :  { %vm1175_vm15 = vmor %vm1173_vm14, %vm1174_vm13 }
 0xda0   :  { %v1170_v58 = vsub.f32 1.0, %v1169_v21 }
 0xda2   :  { %v1171_v63 = vmul.f32 %v1516_v62, %v1170_v58 }
 0xda4   :  { %v1172_v4 = vadd.f32 %v1516_v62, %v1171_v63 }
 0xda6   :  { %v1176_v20 = vsel %vm1175_vm15, %v1516_v62, %v1172_v4 }
 0xda7   :  { %v1181_v9 = vsel %vm1178_vm1, %v1180_v22, %v1176_v20 }
 0xda8   :  { %v1199_v7 = vmul.f32 %v1181_v9, %v2179_v43 }
 0xe06   :  { %v1202_v27 = vpop.permute.xlu0 %1201 }
 0xe07   :  { %v1204_v57 = vmul.f32 %v1202_v27, %v1181_v9 }
 0xe09   :  { %1206 = vrot.lane.b32.xlu1 %v1204_v57, %s1544_s22 }
 0xe7b   :  { %v1207_v31 = vpop.permute.xlu1 %1206 }
 0xe7c   :  { %v1209_v32 = vadd.f32 %v1207_v31, %v1199_v7 }
 0xe7e   :  { %1517 = vtanh.f32 %v1209_v32 }
 0xe7f   :  { %1519 = vpow2.f32 %v1411_v33 }
 0xe84   :  { %v1518_v3 = vpop.eup %1517 }
 0xe85   :  { %1212 = vrot.lane.b32.xlu2 %v1518_v3, %s1544_s22  ;;  %v1520_v34 = vpop.eup %1519 }
 0xe86   :  { %v1167_v35 = vadd.f32 1.0, %v1520_v34 }
 0xe88   :  { %1521 = vrcp.f32 %v1167_v35  ;;  %v1194_v49 = vand.u32 2147483648, %v1167_v35  ;;  %vm1188_vm3 = vweird.f32 %v1167_v35  ;;  %v1192_v51 = vand.u32 2147483647, %v1167_v35 }
 0xe8a   :  { %v1195_v11 = vor.u32 1.1754944e-38, %v1194_v49  ;;  %vm1193_vm5 = vcmp.eq.f32.partialorder %v1192_v51, 8.507059e+37 }
 0xe8e   :  { %v1522_v39 = vpop.eup %1521 }
 0xe8f   :  { %v1184_v41 = vmul.f32 %v1522_v39, %v1167_v35  ;;  %vm1189_vm2 = vweird.f32 %v1522_v39 }
 0xe90   :  { %vm1190_vm4 = vmor %vm1188_vm3, %vm1189_vm2 }
 0xe91   :  { %v1185_v43 = vsub.f32 1.0, %v1184_v41 }
 0xe93   :  { %v1186_v44 = vmul.f32 %v1522_v39, %v1185_v43 }
 0xe95   :  { %v1187_v30 = vadd.f32 %v1522_v39, %v1186_v44 }
 0xe97   :  { %v1191_v8 = vsel %vm1190_vm4, %v1522_v39, %v1187_v30 }
 0xe98   :  { %v1196_v53 = vsel %vm1193_vm5, %v1195_v11, %v1191_v8 }
 0xedf   :  { %v1213_v13 = vpop.permute.xlu2 %1212 }
 0xee0   :  { %v1215_v54 = vmul.f32 %v1213_v13, %v1196_v53 }
 0xee2   :  { %1420 = vmatmul.msk.f32.vlgmr.msrb.gmra.mxu3 %vm186_vm9, %v1215_v54  ;;  %vm1262_vm9 = vcmask 261120  }
 0xf65   :  { %v1245_v45 = vpop.f32.mrf.mxu3 }
 0xf66   :  { %v1248_v46 = vadd.f32 %v1245_v45, %v1115_v42 }
 0xf68   :  { %v1253_v47 = vadd.f32 %v1425_v16, %v1248_v46 }
 0xf6a   :  { %1421 = vmatmul.msk.f32.vlgmr.msrb.gmra.mxu0 %vm1262_vm9, %v1253_v47 }
 0xfe7   :  { %v1283_v12 = vpop.f32.mrf.mxu0 }
 0xfe8   :  { %v1284_v19 = vadd.f32 %v1426_v40, %v1283_v12 }
 0xfea   :  { %v1422_v61 = vmul.f32 -1.442695, %v1284_v19 }
 0xfec   :  { %1523 = vpow2.f32 %v1422_v61 }
 0xff2   :  { %v1524_v48 = vpop.eup %1523 }
 0xff3   :  { %v1289_v59 = vadd.f32 1.0, %v1524_v48 }
 0xff5   :  { %1525 = vrcp.f32 %v1289_v59  ;;  %v1301_v6 = vand.u32 2147483648, %v1289_v59  ;;  %v1299_v62 = vand.u32 2147483647, %v1289_v59  ;;  %vm1295_vm0 = vweird.f32 %v1289_v59 }
 0xff7   :  { %v1302_v58 = vor.u32 1.1754944e-38, %v1301_v6  ;;  %vm1300_vm10 = vcmp.eq.f32.partialorder %v1299_v62, 8.507059e+37 }
 0xffb   :  { %v1526_v55 = vpop.eup %1525 }
 0xffc   :  { %v1291_v50 = vmul.f32 %v1526_v55, %v1289_v59  ;;  %vm1296_vm6 = vweird.f32 %v1526_v55 }
 0xffd   :  { %vm1297_vm7 = vmor %vm1295_vm0, %vm1296_vm6 }
 0xffe   :  { %v1292_v5 = vsub.f32 1.0, %v1291_v50 }
0x1000   :  { %v1293_v60 = vmul.f32 %v1526_v55, %v1292_v5 }
0x1002   :  { %v1294_v21 = vadd.f32 %v1526_v55, %v1293_v60 }
0x1004   :  { %v1298_v63 = vsel %vm1297_vm7, %v1526_v55, %v1294_v21 }
0x1005   :  { %v1303_v4 = vsel %vm1300_vm10, %v1302_v58, %v1298_v63 }
0x1006   :  { %1306 = vst.msk [vmem:[%s2258_s8] sm:$0xff] %vm1305_vm8, %v1303_v4 }

</bundles_post_ra>
